<compile_context>
chip_gen: v7x
topology: tpu7x:2x2x1
jax: 0.10.0
libtpu: 0.0.40
codegen_flags: <defaults>
</compile_context>

<pallas_src>
import functools

import jax
import jax.numpy as jnp
from jax.experimental import pallas as pl
from jax.experimental.pallas import tpu as pltpu


# ------------------------------------------------------------------------------------------------
# Kernel 1: GRU recurrence.  grid=(1,); the time loop lives inside the kernel (lax.fori_loop) so
# there is no per-step grid overhead.  Input gates for all steps are computed by one fused matmul
# before the loop; the per-step critical path is a single (B,H)x(H,3H) matmul + elementwise gates.
# ------------------------------------------------------------------------------------------------
def _gru_kernel(
    emb_ref,      # (S, Bp, E)   time-major embedded inputs
    h0_ref,       # (Bp, H)      initial hidden state
    w_i_ref,      # (E, 3H)      packed, pre-transposed input weights [r|z|n]
    b_i_ref,      # (1, 3H)      packed input biases
    w_h_ref,      # (H, 3H)      packed, pre-transposed hidden weights [r|z|n]
    b_h_ref,      # (1, 3H)      packed hidden biases
    h_all_ref,    # (S, Bp, H)   all hidden states (GRU outputs)
    h_last_ref,   # (Bp, H)      final hidden state
    gi_scr,       # VMEM (S, Bp, 3H) scratch: precomputed input-gate activations
):
    f32 = jnp.float32
    S, Bp, E = emb_ref.shape
    H = h0_ref.shape[1]

    # Hoisted input-gate matmul for every time step at once (one big MXU matmul).
    emb2 = emb_ref[...].reshape(S * Bp, E)
    gi = jnp.dot(emb2, w_i_ref[...], preferred_element_type=f32) + b_i_ref[...]
    gi_scr[...] = gi.reshape(S, Bp, 3 * H)

    w_h = w_h_ref[...]
    b_h = b_h_ref[...]

    def step(t, h):
        gi_t = gi_scr[t]                                                   # (Bp, 3H)
        gh = jnp.dot(h, w_h, preferred_element_type=f32) + b_h             # (Bp, 3H)
        # PyTorch GRU gate order r, z, n; r gates only the hidden part of n.
        r = jax.nn.sigmoid(gi_t[:, 0:H] + gh[:, 0:H])
        z = jax.nn.sigmoid(gi_t[:, H:2 * H] + gh[:, H:2 * H])
        n = jnp.tanh(gi_t[:, 2 * H:3 * H] + r * gh[:, 2 * H:3 * H])
        h_new = (1.0 - z) * n + z * h
        h_all_ref[t] = h_new
        return h_new

    h_last_ref[...] = jax.lax.fori_loop(0, S, step, h0_ref[...], unroll=True)


def _run_gru(emb_sbe, h0, w_i_t, b_i, w_h_t, b_h):
    S, Bp, E = emb_sbe.shape
    H = h0.shape[1]

    full = lambda shape: pl.BlockSpec(shape, lambda i: (0,) * len(shape))

    grid_spec = pltpu.PrefetchScalarGridSpec(
        num_scalar_prefetch=0,
        grid=(1,),
        in_specs=[
            full((S, Bp, E)),
            full((Bp, H)),
            full((E, 3 * H)), full((1, 3 * H)),
            full((H, 3 * H)), full((1, 3 * H)),
        ],
        out_specs=[
            full((S, Bp, H)),
            full((Bp, H)),
        ],
        scratch_shapes=[pltpu.VMEM((S, Bp, 3 * H), jnp.float32)],
    )

    return pl.pallas_call(
        _gru_kernel,
        out_shape=(
            jax.ShapeDtypeStruct((S, Bp, H), jnp.float32),
            jax.ShapeDtypeStruct((Bp, H), jnp.float32),
        ),
        grid_spec=grid_spec,
        compiler_params=pltpu.CompilerParams(dimension_semantics=("arbitrary",)),
    )(emb_sbe, h0, w_i_t, b_i, w_h_t, b_h)


# ------------------------------------------------------------------------------------------------
# Kernel 2: attention + output projection + log-softmax.  Fully parallel over sequence tiles
# (dimension_semantics=("parallel",)).  Scores/mix use batched MXU einsums; the Linear(2H->H)
# concat is realized as two pre-transposed HxH matmuls on the flattened (B*tS, H) slab; the vocab
# projection runs against a lane-dense (H, Vp) weight (padded vocab lanes carry bias -1e30).
# ------------------------------------------------------------------------------------------------
def _attn_proj_kernel(
    h_ref,        # (Bp, tS, H)  GRU outputs for this sequence tile
    enc_ref,      # (Bp, Lp, H)  encoder outputs (L padded to 128-multiple with zeros)
    w_mix_ref,    # (H, H)       attn Linear, columns acting on the context `mix`
    w_hout_ref,   # (H, H)       attn Linear, columns acting on the GRU output
    b_att_ref,    # (1, H)
    w_out_ref,    # (H, Vp)      output projection (pre-transposed, V padded)
    b_out_ref,    # (1, Vp)      output bias (-1e30 on padded vocab lanes)
    logp_ref,     # (Bp, tS, Vp)
    attn_ref,     # (Bp, tS, Lp)
    *,
    l_valid,      # static: true encoder length L
):
    f32 = jnp.float32
    h = h_ref[...]                     # (Bp, tS, H)
    enc = enc_ref[...]                 # (Bp, Lp, H)
    Bp, tS, H = h.shape
    Lp = enc.shape[1]
    Vp = w_out_ref.shape[1]

    # --- dot-product attention scores over encoder length (batched MXU matmul) ---
    scores = jnp.einsum("bsh,blh->bsl", h, enc, preferred_element_type=f32)  # (Bp, tS, Lp)
    if l_valid < Lp:                                                         # mask padded positions
        lane = jax.lax.broadcasted_iota(jnp.int32, scores.shape, 2)
        scores = jnp.where(lane < l_valid, scores, jnp.float32(-1e30))
    m = jnp.max(scores, axis=-1, keepdims=True)
    e = jnp.exp(scores - m)
    attn_w = e / jnp.sum(e, axis=-1, keepdims=True)                          # (Bp, tS, Lp)
    mix = jnp.einsum("bsl,blh->bsh", attn_w, enc, preferred_element_type=f32)  # (Bp, tS, H)

    # --- Linear(2H -> H) on concat(mix, output) as two matmuls, then tanh ---
    h2 = h.reshape(Bp * tS, H)
    mix2 = mix.reshape(Bp * tS, H)
    att = jnp.tanh(
        jnp.dot(mix2, w_mix_ref[...], preferred_element_type=f32)
        + jnp.dot(h2, w_hout_ref[...], preferred_element_type=f32)
        + b_att_ref[...]
    )                                                                        # (Bp*tS, H)

    # --- output projection + log-softmax over (padded) vocab ---
    logits = jnp.dot(att, w_out_ref[...], preferred_element_type=f32) + b_out_ref[...]  # (Bp*tS, Vp)
    lm = jnp.max(logits, axis=-1, keepdims=True)
    lse = jnp.log(jnp.sum(jnp.exp(logits - lm), axis=-1, keepdims=True)) + lm
    logp = logits - lse

    logp_ref[...] = logp.reshape(Bp, tS, Vp)
    attn_ref[...] = attn_w


def _run_attn_proj(h_bsh, enc, w_mix_t, w_hout_t, b_att, w_out_t, b_out_p, l_valid, block_s):
    Bp, S, H = h_bsh.shape
    Lp = enc.shape[1]
    Vp = w_out_t.shape[1]
    num_s_blocks = pl.cdiv(S, block_s)

    const = lambda shape: pl.BlockSpec(shape, lambda s: (0,) * len(shape))

    grid_spec = pltpu.PrefetchScalarGridSpec(
        num_scalar_prefetch=0,
        grid=(num_s_blocks,),
        in_specs=[
            pl.BlockSpec((Bp, block_s, H), lambda s: (0, s, 0)),
            const((Bp, Lp, H)),
            const((H, H)), const((H, H)), const((1, H)),
            const((H, Vp)), const((1, Vp)),
        ],
        out_specs=[
            pl.BlockSpec((Bp, block_s, Vp), lambda s: (0, s, 0)),
            pl.BlockSpec((Bp, block_s, Lp), lambda s: (0, s, 0)),
        ],
    )

    kernel = functools.partial(_attn_proj_kernel, l_valid=l_valid)

    return pl.pallas_call(
        kernel,
        out_shape=(
            jax.ShapeDtypeStruct((Bp, S, Vp), jnp.float32),
            jax.ShapeDtypeStruct((Bp, S, Lp), jnp.float32),
        ),
        grid_spec=grid_spec,
        compiler_params=pltpu.CompilerParams(dimension_semantics=("parallel",)),
    )(h_bsh, enc, w_mix_t, w_hout_t, b_att, w_out_t, b_out_p)


# ------------------------------------------------------------------------------------------------
# Wrapper: embedding gather, padding / layout plumbing, weight packing (done once, outside kernels)
# ------------------------------------------------------------------------------------------------
def _round_up(n, m):
    return ((n + m - 1) // m) * m


def _pad_axis(x, axis, target):
    pad = target - x.shape[axis]
    if pad <= 0:
        return x
    widths = [(0, 0)] * x.ndim
    widths[axis] = (0, pad)
    return jnp.pad(x, widths)


def _cat_directions(h):
    # (#dirs * #layers, B, H) -> (#layers, B, #dirs * H)
    return jnp.concatenate([h[0::2], h[1::2]], axis=2)


def _pack_kernel_params(p, vp):
    """Pre-concatenate GRU gate weights [r|z|n], pre-transpose everything, pad vocab to vp."""
    v = p["w_out"].shape[0]
    w_i = jnp.concatenate([p["w_ir"], p["w_iz"], p["w_in"]], axis=0)   # (3H, E)
    w_h = jnp.concatenate([p["w_hr"], p["w_hz"], p["w_hn"]], axis=0)   # (3H, H)
    b_i = jnp.concatenate([p["b_ir"], p["b_iz"], p["b_in"]], axis=1)   # (1, 3H)
    b_h = jnp.concatenate([p["b_hr"], p["b_hz"], p["b_hn"]], axis=1)   # (1, 3H)
    pad_v = vp - v
    w_out_t = jnp.pad(p["w_out"].T, ((0, 0), (0, pad_v)))              # (H, Vp)
    b_out_p = jnp.pad(p["b_out"], ((0, 0), (0, pad_v)), constant_values=-1e30)  # (1, Vp)
    f32 = jnp.float32
    return dict(
        w_i_t=w_i.T.astype(f32),            # (E, 3H)
        b_i=b_i.astype(f32),
        w_h_t=w_h.T.astype(f32),            # (H, 3H)
        b_h=b_h.astype(f32),
        w_att_mix_t=p["w_att_mix"].T.astype(f32),
        w_att_out_t=p["w_att_out"].T.astype(f32),
        b_att=p["b_att"].astype(f32),
        w_out_t=w_out_t.astype(f32),
        b_out_p=b_out_p.astype(f32),
    )


@functools.partial(jax.jit, static_argnames=("bidirection",))
def decoder_rnn_forward(params, decoder_input, encoder_hidden, encoder_outputs,
                        bidirection=False):
    decoder_hidden = _cat_directions(encoder_hidden) if bidirection else encoder_hidden

    B, S = decoder_input.shape
    L = encoder_outputs.shape[1]
    H = params["w_hr"].shape[0]
    V = params["w_out"].shape[0]

    Bp = _round_up(max(B, 8), 8)       # sublane-friendly batch
    Lp = _round_up(max(L, 128), 128)   # lane-dense attention output
    Vp = _round_up(max(V, 128), 128)   # lane-dense log-prob output

    kp = _pack_kernel_params(params, Vp)

    # embedding (padding_idx=0 handled by a zero row); dropout is eval-mode identity
    embedded = jnp.take(params["emb_table"], decoder_input, axis=0).astype(jnp.float32)  # (B, S, E)
    embedded = _pad_axis(embedded, 0, Bp)                                                # (Bp, S, E)
    emb_sbe = jnp.transpose(embedded, (1, 0, 2))                                         # (S, Bp, E)

    h0 = _pad_axis(decoder_hidden[0].astype(jnp.float32), 0, Bp)                         # (Bp, H)
    enc = _pad_axis(_pad_axis(encoder_outputs.astype(jnp.float32), 0, Bp), 1, Lp)        # (Bp, Lp, H)

    # --- serial GRU recurrence (Pallas kernel 1) ---
    h_all_sbh, h_last = _run_gru(emb_sbe, h0, kp["w_i_t"], kp["b_i"], kp["w_h_t"], kp["b_h"])
    h_all = jnp.transpose(h_all_sbh, (1, 0, 2))                                          # (Bp, S, H)

    # --- parallel attention + projection + log-softmax (Pallas kernel 2) ---
    # At small S one tile covers the whole sequence; for long S choose a multiple-of-8 tile.
    block_s = S
    logp, attn_w = _run_attn_proj(h_all, enc, kp["w_att_mix_t"], kp["w_att_out_t"],
                                  kp["b_att"], kp["w_out_t"], kp["b_out_p"], L, block_s)

    decoder_output = logp[:B, :, :V]            # (B, S, V)
    decoder_hidden_out = h_last[:B][None]       # (1, B, H)
    attn_weight = attn_w[:B, :, :L]             # (B, S, L)
    return decoder_output, decoder_hidden_out, attn_weight


# ------------------------------------------------------------------------------------------------
# Pure-JAX reference (numerical sanity check for the kernels)
# ------------------------------------------------------------------------------------------------
def _reference_forward(params, decoder_input, encoder_hidden, encoder_outputs):
    emb = jnp.take(params["emb_table"], decoder_input, axis=0)        # (B, S, E)
    B, S, _ = emb.shape
    h = encoder_hidden[0]
    outs, attns = [], []
    for t in range(S):
        x = emb[:, t, :]
        r = jax.nn.sigmoid(x @ params["w_ir"].T + params["b_ir"] + h @ params["w_hr"].T + params["b_hr"])
        z = jax.nn.sigmoid(x @ params["w_iz"].T + params["b_iz"] + h @ params["w_hz"].T + params["b_hz"])
        n = jnp.tanh(x @ params["w_in"].T + params["b_in"] + r * (h @ params["w_hn"].T + params["b_hn"]))
        h = (1.0 - z) * n + z * h
        scores = jnp.einsum("bh,blh->bl", h, encoder_outputs)
        aw = jax.nn.softmax(scores, axis=-1)
        mix = jnp.einsum("bl,blh->bh", aw, encoder_outputs)
        att = jnp.tanh(mix @ params["w_att_mix"].T + h @ params["w_att_out"].T + params["b_att"])
        logits = att @ params["w_out"].T + params["b_out"]
        outs.append(jax.nn.log_softmax(logits, axis=-1))
        attns.append(aw)
    return jnp.stack(outs, axis=1), h[None], jnp.stack(attns, axis=1)


# ------------------------------------------------------------------------------------------------
def init_params(key, hidden_size, emb_size, output_size):
    ks = jax.random.split(key, 12)
    s = 0.1
    emb_table = s * jax.random.normal(ks[0], (output_size, emb_size), jnp.float32)
    emb_table = emb_table.at[0].set(0.0)   # padding_idx=0
    p = {
        "emb_table": emb_table,
        "w_ir": s * jax.random.normal(ks[1], (hidden_size, emb_size), jnp.float32),
        "w_iz": s * jax.random.normal(ks[2], (hidden_size, emb_size), jnp.float32),
        "w_in": s * jax.random.normal(ks[3], (hidden_size, emb_size), jnp.float32),
        "w_hr": s * jax.random.normal(ks[4], (hidden_size, hidden_size), jnp.float32),
        "w_hz": s * jax.random.normal(ks[5], (hidden_size, hidden_size), jnp.float32),
        "w_hn": s * jax.random.normal(ks[6], (hidden_size, hidden_size), jnp.float32),
        "b_ir": jnp.full((1, hidden_size), 0.01, jnp.float32),
        "b_iz": jnp.full((1, hidden_size), 0.02, jnp.float32),
        "b_in": jnp.full((1, hidden_size), 0.03, jnp.float32),
        "b_hr": jnp.full((1, hidden_size), 0.04, jnp.float32),
        "b_hz": jnp.full((1, hidden_size), 0.05, jnp.float32),
        "b_hn": jnp.full((1, hidden_size), 0.06, jnp.float32),
        "w_att_mix": s * jax.random.normal(ks[7], (hidden_size, hidden_size), jnp.float32),
        "w_att_out": s * jax.random.normal(ks[8], (hidden_size, hidden_size), jnp.float32),
        "b_att": jnp.full((1, hidden_size), 0.01, jnp.float32),
        "w_out": s * jax.random.normal(ks[9], (output_size, hidden_size), jnp.float32),
        "b_out": jnp.full((1, output_size), 0.02, jnp.float32),
    }
    return p


if __name__ == "__main__":
    hidden_size, emb_size, output_size = 32, 16, 64
    B, S, L = 2, 8, 10   # batch, decoder steps, encoder length

    key = jax.random.PRNGKey(0)
    k_par, k_in, k_h, k_enc = jax.random.split(key, 4)

    params = init_params(k_par, hidden_size, emb_size, output_size)
    decoder_input = jax.random.randint(k_in, (B, S), 0, output_size, dtype=jnp.int32)
    encoder_hidden = 0.1 * jax.random.normal(k_h, (1, B, hidden_size), jnp.float32)
    encoder_outputs = 0.1 * jax.random.normal(k_enc, (B, L, hidden_size), jnp.float32)

    out, hid, attn = decoder_rnn_forward(params, decoder_input, encoder_hidden,
                                         encoder_outputs, bidirection=False)
    jax.block_until_ready((out, hid, attn))

    ref_out, ref_hid, ref_attn = _reference_forward(params, decoder_input,
                                                    encoder_hidden, encoder_outputs)
    assert out.shape == (B, S, output_size)
    assert hid.shape == (1, B, hidden_size)
    assert attn.shape == (B, S, L)
    assert jnp.allclose(out, ref_out, atol=1e-3, rtol=1e-3)
    assert jnp.allclose(hid, ref_hid, atol=1e-3, rtol=1e-3)
    assert jnp.allclose(attn, ref_attn, atol=1e-3, rtol=1e-3)

    print("KERNEL_OK")
</pallas_src>

<mosaic_0001>
module attributes {stable_mosaic.version = 11 : i64} {
  func.func @_gru_kernel(%arg0: i32, %arg1: memref<8x8x16xf32, #tpu.memory_space<vmem>>, %arg2: memref<8x32xf32, #tpu.memory_space<vmem>>, %arg3: memref<16x96xf32, #tpu.memory_space<vmem>>, %arg4: memref<1x96xf32, #tpu.memory_space<vmem>>, %arg5: memref<32x96xf32, #tpu.memory_space<vmem>>, %arg6: memref<1x96xf32, #tpu.memory_space<vmem>>, %arg7: memref<8x8x32xf32, #tpu.memory_space<vmem>>, %arg8: memref<8x32xf32, #tpu.memory_space<vmem>>, %arg9: memref<8x8x96xf32, #tpu.memory_space<vmem>>) attributes {dimension_semantics = [#tpu.dimension_semantics<arbitrary>], iteration_bounds = array<i64: 1>, scalar_prefetch = 0 : i64, scratch_operands = 1 : i64, tpu.core_type = #tpu.core_type<tc>, window_params = [{pipeline_mode = #tpu.pipeline_mode<synchronous>, transform_indices = @transform_0, window_bounds = array<i64: 8, 8, 16>}, {pipeline_mode = #tpu.pipeline_mode<synchronous>, transform_indices = @transform_1, window_bounds = array<i64: 8, 32>}, {pipeline_mode = #tpu.pipeline_mode<synchronous>, transform_indices = @transform_2, window_bounds = array<i64: 16, 96>}, {pipeline_mode = #tpu.pipeline_mode<synchronous>, transform_indices = @transform_3, window_bounds = array<i64: 1, 96>}, {pipeline_mode = #tpu.pipeline_mode<synchronous>, transform_indices = @transform_4, window_bounds = array<i64: 32, 96>}, {pipeline_mode = #tpu.pipeline_mode<synchronous>, transform_indices = @transform_5, window_bounds = array<i64: 1, 96>}, {pipeline_mode = #tpu.pipeline_mode<synchronous>, transform_indices = @transform_6, window_bounds = array<i64: 8, 8, 32>}, {pipeline_mode = #tpu.pipeline_mode<synchronous>, transform_indices = @transform_7, window_bounds = array<i64: 8, 32>}]} {
    %c0 = arith.constant 0 : index
    %c0_0 = arith.constant 0 : index
    %c0_1 = arith.constant 0 : index
    %0 = vector.load %arg1[%c0, %c0_0, %c0_1] : memref<8x8x16xf32, #tpu.memory_space<vmem>>, vector<8x8x16xf32>
    %1 = vector.shape_cast %0 : vector<8x8x16xf32> to vector<64x16xf32>
    %c0_2 = arith.constant 0 : index
    %c0_3 = arith.constant 0 : index
    %2 = vector.load %arg3[%c0_2, %c0_3] : memref<16x96xf32, #tpu.memory_space<vmem>>, vector<16x96xf32>
    %cst = arith.constant dense<0.000000e+00> : vector<64x96xf32>
    %3 = tpu.matmul %1, %2, %cst {dimension_numbers = #tpu.dot_dimension_numbers<[1], [0], [0], [1], [0, 0, 1, 1], [], []>} : vector<64x16xf32>, vector<16x96xf32>, vector<64x96xf32> -> vector<64x96xf32>
    %c0_4 = arith.constant 0 : index
    %c0_5 = arith.constant 0 : index
    %4 = vector.load %arg4[%c0_4, %c0_5] : memref<1x96xf32, #tpu.memory_space<vmem>>, vector<1x96xf32>
    %5 = vector.broadcast %4 : vector<1x96xf32> to vector<64x96xf32>
    %6 = arith.addf %3, %5 : vector<64x96xf32>
    %7 = vector.shape_cast %6 : vector<64x96xf32> to vector<8x8x96xf32>
    %c0_6 = arith.constant 0 : index
    %c0_7 = arith.constant 0 : index
    %c0_8 = arith.constant 0 : index
    %8 = vector.load %arg9[%c0_6, %c0_7, %c0_8] : memref<8x8x96xf32, #tpu.memory_space<vmem>>, vector<8x8x96xf32>
    tpu.vector_store %arg9[%c0_6, %c0_7, %c0_8], %7 {strides = array<i32>} : memref<8x8x96xf32, #tpu.memory_space<vmem>>, vector<8x8x96xf32>,
    %c0_9 = arith.constant 0 : index
    %c0_10 = arith.constant 0 : index
    %9 = vector.load %arg5[%c0_9, %c0_10] : memref<32x96xf32, #tpu.memory_space<vmem>>, vector<32x96xf32>
    %c0_11 = arith.constant 0 : index
    %c0_12 = arith.constant 0 : index
    %10 = vector.load %arg6[%c0_11, %c0_12] : memref<1x96xf32, #tpu.memory_space<vmem>>, vector<1x96xf32>
    %c0_13 = arith.constant 0 : index
    %c0_14 = arith.constant 0 : index
    %11 = vector.load %arg2[%c0_13, %c0_14] : memref<8x32xf32, #tpu.memory_space<vmem>>, vector<8x32xf32>
    %c0_i32 = arith.constant 0 : i32
    %12 = arith.index_cast %c0_i32 : i32 to index
    %c0_15 = arith.constant 0 : index
    %c0_16 = arith.constant 0 : index
    %13 = vector.load %arg9[%12, %c0_15, %c0_16] : memref<8x8x96xf32, #tpu.memory_space<vmem>>, vector<1x8x96xf32>
    %14 = vector.shape_cast %13 : vector<1x8x96xf32> to vector<8x96xf32>
    %cst_17 = arith.constant dense<0.000000e+00> : vector<8x96xf32>
    %15 = tpu.matmul %11, %9, %cst_17 {dimension_numbers = #tpu.dot_dimension_numbers<[1], [0], [0], [1], [0, 0, 1, 1], [], []>} : vector<8x32xf32>, vector<32x96xf32>, vector<8x96xf32> -> vector<8x96xf32>
    %16 = vector.broadcast %10 : vector<1x96xf32> to vector<8x96xf32>
    %17 = arith.addf %15, %16 : vector<8x96xf32>
    %18 = vector.extract_strided_slice %14 {offsets = [0, 0], sizes = [8, 32], strides = [1, 1]} : vector<8x96xf32> to vector<8x32xf32>
    %19 = vector.extract_strided_slice %17 {offsets = [0, 0], sizes = [8, 32], strides = [1, 1]} : vector<8x96xf32> to vector<8x32xf32>
    %20 = arith.addf %18, %19 : vector<8x32xf32>
    %21 = arith.negf %20 : vector<8x32xf32>
    %22 = math.exp %21 : vector<8x32xf32>
    %cst_18 = arith.constant 1.000000e+00 : f32
    %23 = vector.broadcast %cst_18 : f32 to vector<8x32xf32>
    %24 = arith.addf %23, %22 : vector<8x32xf32>
    %25 = arith.divf %23, %24 : vector<8x32xf32>
    %26 = vector.extract_strided_slice %14 {offsets = [0, 32], sizes = [8, 32], strides = [1, 1]} : vector<8x96xf32> to vector<8x32xf32>
    %27 = vector.extract_strided_slice %17 {offsets = [0, 32], sizes = [8, 32], strides = [1, 1]} : vector<8x96xf32> to vector<8x32xf32>
    %28 = arith.addf %26, %27 : vector<8x32xf32>
    %29 = arith.negf %28 : vector<8x32xf32>
    %30 = math.exp %29 : vector<8x32xf32>
    %cst_19 = arith.constant 1.000000e+00 : f32
    %31 = vector.broadcast %cst_19 : f32 to vector<8x32xf32>
    %32 = arith.addf %31, %30 : vector<8x32xf32>
    %33 = arith.divf %31, %32 : vector<8x32xf32>
    %34 = vector.extract_strided_slice %14 {offsets = [0, 64], sizes = [8, 32], strides = [1, 1]} : vector<8x96xf32> to vector<8x32xf32>
    %35 = vector.extract_strided_slice %17 {offsets = [0, 64], sizes = [8, 32], strides = [1, 1]} : vector<8x96xf32> to vector<8x32xf32>
    %36 = arith.mulf %25, %35 : vector<8x32xf32>
    %37 = arith.addf %34, %36 : vector<8x32xf32>
    %38 = math.tanh %37 : vector<8x32xf32>
    %cst_20 = arith.constant 1.000000e+00 : f32
    %39 = vector.broadcast %cst_20 : f32 to vector<8x32xf32>
    %40 = arith.subf %39, %33 : vector<8x32xf32>
    %41 = arith.mulf %40, %38 : vector<8x32xf32>
    %42 = arith.mulf %33, %11 : vector<8x32xf32>
    %43 = arith.addf %41, %42 : vector<8x32xf32>
    %44 = arith.index_cast %c0_i32 : i32 to index
    %c0_21 = arith.constant 0 : index
    %c0_22 = arith.constant 0 : index
    %45 = vector.load %arg7[%44, %c0_21, %c0_22] : memref<8x8x32xf32, #tpu.memory_space<vmem>>, vector<1x8x32xf32>
    %46 = vector.shape_cast %45 : vector<1x8x32xf32> to vector<8x32xf32>
    %47 = vector.shape_cast %43 : vector<8x32xf32> to vector<1x8x32xf32>
    tpu.vector_store %arg7[%44, %c0_21, %c0_22], %47 {strides = array<i32>} : memref<8x8x32xf32, #tpu.memory_space<vmem>>, vector<1x8x32xf32>,
    %c1_i32 = arith.constant 1 : i32
    %48 = arith.index_cast %c1_i32 : i32 to index
    %c0_23 = arith.constant 0 : index
    %c0_24 = arith.constant 0 : index
    %49 = vector.load %arg9[%48, %c0_23, %c0_24] : memref<8x8x96xf32, #tpu.memory_space<vmem>>, vector<1x8x96xf32>
    %50 = vector.shape_cast %49 : vector<1x8x96xf32> to vector<8x96xf32>
    %cst_25 = arith.constant dense<0.000000e+00> : vector<8x96xf32>
    %51 = tpu.matmul %43, %9, %cst_25 {dimension_numbers = #tpu.dot_dimension_numbers<[1], [0], [0], [1], [0, 0, 1, 1], [], []>} : vector<8x32xf32>, vector<32x96xf32>, vector<8x96xf32> -> vector<8x96xf32>
    %52 = vector.broadcast %10 : vector<1x96xf32> to vector<8x96xf32>
    %53 = arith.addf %51, %52 : vector<8x96xf32>
    %54 = vector.extract_strided_slice %50 {offsets = [0, 0], sizes = [8, 32], strides = [1, 1]} : vector<8x96xf32> to vector<8x32xf32>
    %55 = vector.extract_strided_slice %53 {offsets = [0, 0], sizes = [8, 32], strides = [1, 1]} : vector<8x96xf32> to vector<8x32xf32>
    %56 = arith.addf %54, %55 : vector<8x32xf32>
    %57 = arith.negf %56 : vector<8x32xf32>
    %58 = math.exp %57 : vector<8x32xf32>
    %cst_26 = arith.constant 1.000000e+00 : f32
    %59 = vector.broadcast %cst_26 : f32 to vector<8x32xf32>
    %60 = arith.addf %59, %58 : vector<8x32xf32>
    %61 = arith.divf %59, %60 : vector<8x32xf32>
    %62 = vector.extract_strided_slice %50 {offsets = [0, 32], sizes = [8, 32], strides = [1, 1]} : vector<8x96xf32> to vector<8x32xf32>
    %63 = vector.extract_strided_slice %53 {offsets = [0, 32], sizes = [8, 32], strides = [1, 1]} : vector<8x96xf32> to vector<8x32xf32>
    %64 = arith.addf %62, %63 : vector<8x32xf32>
    %65 = arith.negf %64 : vector<8x32xf32>
    %66 = math.exp %65 : vector<8x32xf32>
    %cst_27 = arith.constant 1.000000e+00 : f32
    %67 = vector.broadcast %cst_27 : f32 to vector<8x32xf32>
    %68 = arith.addf %67, %66 : vector<8x32xf32>
    %69 = arith.divf %67, %68 : vector<8x32xf32>
    %70 = vector.extract_strided_slice %50 {offsets = [0, 64], sizes = [8, 32], strides = [1, 1]} : vector<8x96xf32> to vector<8x32xf32>
    %71 = vector.extract_strided_slice %53 {offsets = [0, 64], sizes = [8, 32], strides = [1, 1]} : vector<8x96xf32> to vector<8x32xf32>
    %72 = arith.mulf %61, %71 : vector<8x32xf32>
    %73 = arith.addf %70, %72 : vector<8x32xf32>
    %74 = math.tanh %73 : vector<8x32xf32>
    %cst_28 = arith.constant 1.000000e+00 : f32
    %75 = vector.broadcast %cst_28 : f32 to vector<8x32xf32>
    %76 = arith.subf %75, %69 : vector<8x32xf32>
    %77 = arith.mulf %76, %74 : vector<8x32xf32>
    %78 = arith.mulf %69, %43 : vector<8x32xf32>
    %79 = arith.addf %77, %78 : vector<8x32xf32>
    %80 = arith.index_cast %c1_i32 : i32 to index
    %c0_29 = arith.constant 0 : index
    %c0_30 = arith.constant 0 : index
    %81 = vector.load %arg7[%80, %c0_29, %c0_30] : memref<8x8x32xf32, #tpu.memory_space<vmem>>, vector<1x8x32xf32>
    %82 = vector.shape_cast %81 : vector<1x8x32xf32> to vector<8x32xf32>
    %83 = vector.shape_cast %79 : vector<8x32xf32> to vector<1x8x32xf32>
    tpu.vector_store %arg7[%80, %c0_29, %c0_30], %83 {strides = array<i32>} : memref<8x8x32xf32, #tpu.memory_space<vmem>>, vector<1x8x32xf32>,
    %c2_i32 = arith.constant 2 : i32
    %84 = arith.index_cast %c2_i32 : i32 to index
    %c0_31 = arith.constant 0 : index
    %c0_32 = arith.constant 0 : index
    %85 = vector.load %arg9[%84, %c0_31, %c0_32] : memref<8x8x96xf32, #tpu.memory_space<vmem>>, vector<1x8x96xf32>
    %86 = vector.shape_cast %85 : vector<1x8x96xf32> to vector<8x96xf32>
    %cst_33 = arith.constant dense<0.000000e+00> : vector<8x96xf32>
    %87 = tpu.matmul %79, %9, %cst_33 {dimension_numbers = #tpu.dot_dimension_numbers<[1], [0], [0], [1], [0, 0, 1, 1], [], []>} : vector<8x32xf32>, vector<32x96xf32>, vector<8x96xf32> -> vector<8x96xf32>
    %88 = vector.broadcast %10 : vector<1x96xf32> to vector<8x96xf32>
    %89 = arith.addf %87, %88 : vector<8x96xf32>
    %90 = vector.extract_strided_slice %86 {offsets = [0, 0], sizes = [8, 32], strides = [1, 1]} : vector<8x96xf32> to vector<8x32xf32>
    %91 = vector.extract_strided_slice %89 {offsets = [0, 0], sizes = [8, 32], strides = [1, 1]} : vector<8x96xf32> to vector<8x32xf32>
    %92 = arith.addf %90, %91 : vector<8x32xf32>
    %93 = arith.negf %92 : vector<8x32xf32>
    %94 = math.exp %93 : vector<8x32xf32>
    %cst_34 = arith.constant 1.000000e+00 : f32
    %95 = vector.broadcast %cst_34 : f32 to vector<8x32xf32>
    %96 = arith.addf %95, %94 : vector<8x32xf32>
    %97 = arith.divf %95, %96 : vector<8x32xf32>
    %98 = vector.extract_strided_slice %86 {offsets = [0, 32], sizes = [8, 32], strides = [1, 1]} : vector<8x96xf32> to vector<8x32xf32>
    %99 = vector.extract_strided_slice %89 {offsets = [0, 32], sizes = [8, 32], strides = [1, 1]} : vector<8x96xf32> to vector<8x32xf32>
    %100 = arith.addf %98, %99 : vector<8x32xf32>
    %101 = arith.negf %100 : vector<8x32xf32>
    %102 = math.exp %101 : vector<8x32xf32>
    %cst_35 = arith.constant 1.000000e+00 : f32
    %103 = vector.broadcast %cst_35 : f32 to vector<8x32xf32>
    %104 = arith.addf %103, %102 : vector<8x32xf32>
    %105 = arith.divf %103, %104 : vector<8x32xf32>
    %106 = vector.extract_strided_slice %86 {offsets = [0, 64], sizes = [8, 32], strides = [1, 1]} : vector<8x96xf32> to vector<8x32xf32>
    %107 = vector.extract_strided_slice %89 {offsets = [0, 64], sizes = [8, 32], strides = [1, 1]} : vector<8x96xf32> to vector<8x32xf32>
    %108 = arith.mulf %97, %107 : vector<8x32xf32>
    %109 = arith.addf %106, %108 : vector<8x32xf32>
    %110 = math.tanh %109 : vector<8x32xf32>
    %cst_36 = arith.constant 1.000000e+00 : f32
    %111 = vector.broadcast %cst_36 : f32 to vector<8x32xf32>
    %112 = arith.subf %111, %105 : vector<8x32xf32>
    %113 = arith.mulf %112, %110 : vector<8x32xf32>
    %114 = arith.mulf %105, %79 : vector<8x32xf32>
    %115 = arith.addf %113, %114 : vector<8x32xf32>
    %116 = arith.index_cast %c2_i32 : i32 to index
    %c0_37 = arith.constant 0 : index
    %c0_38 = arith.constant 0 : index
    %117 = vector.load %arg7[%116, %c0_37, %c0_38] : memref<8x8x32xf32, #tpu.memory_space<vmem>>, vector<1x8x32xf32>
    %118 = vector.shape_cast %117 : vector<1x8x32xf32> to vector<8x32xf32>
    %119 = vector.shape_cast %115 : vector<8x32xf32> to vector<1x8x32xf32>
    tpu.vector_store %arg7[%116, %c0_37, %c0_38], %119 {strides = array<i32>} : memref<8x8x32xf32, #tpu.memory_space<vmem>>, vector<1x8x32xf32>,
    %c3_i32 = arith.constant 3 : i32
    %120 = arith.index_cast %c3_i32 : i32 to index
    %c0_39 = arith.constant 0 : index
    %c0_40 = arith.constant 0 : index
    %121 = vector.load %arg9[%120, %c0_39, %c0_40] : memref<8x8x96xf32, #tpu.memory_space<vmem>>, vector<1x8x96xf32>
    %122 = vector.shape_cast %121 : vector<1x8x96xf32> to vector<8x96xf32>
    %cst_41 = arith.constant dense<0.000000e+00> : vector<8x96xf32>
    %123 = tpu.matmul %115, %9, %cst_41 {dimension_numbers = #tpu.dot_dimension_numbers<[1], [0], [0], [1], [0, 0, 1, 1], [], []>} : vector<8x32xf32>, vector<32x96xf32>, vector<8x96xf32> -> vector<8x96xf32>
    %124 = vector.broadcast %10 : vector<1x96xf32> to vector<8x96xf32>
    %125 = arith.addf %123, %124 : vector<8x96xf32>
    %126 = vector.extract_strided_slice %122 {offsets = [0, 0], sizes = [8, 32], strides = [1, 1]} : vector<8x96xf32> to vector<8x32xf32>
    %127 = vector.extract_strided_slice %125 {offsets = [0, 0], sizes = [8, 32], strides = [1, 1]} : vector<8x96xf32> to vector<8x32xf32>
    %128 = arith.addf %126, %127 : vector<8x32xf32>
    %129 = arith.negf %128 : vector<8x32xf32>
    %130 = math.exp %129 : vector<8x32xf32>
    %cst_42 = arith.constant 1.000000e+00 : f32
    %131 = vector.broadcast %cst_42 : f32 to vector<8x32xf32>
    %132 = arith.addf %131, %130 : vector<8x32xf32>
    %133 = arith.divf %131, %132 : vector<8x32xf32>
    %134 = vector.extract_strided_slice %122 {offsets = [0, 32], sizes = [8, 32], strides = [1, 1]} : vector<8x96xf32> to vector<8x32xf32>
    %135 = vector.extract_strided_slice %125 {offsets = [0, 32], sizes = [8, 32], strides = [1, 1]} : vector<8x96xf32> to vector<8x32xf32>
    %136 = arith.addf %134, %135 : vector<8x32xf32>
    %137 = arith.negf %136 : vector<8x32xf32>
    %138 = math.exp %137 : vector<8x32xf32>
    %cst_43 = arith.constant 1.000000e+00 : f32
    %139 = vector.broadcast %cst_43 : f32 to vector<8x32xf32>
    %140 = arith.addf %139, %138 : vector<8x32xf32>
    %141 = arith.divf %139, %140 : vector<8x32xf32>
    %142 = vector.extract_strided_slice %122 {offsets = [0, 64], sizes = [8, 32], strides = [1, 1]} : vector<8x96xf32> to vector<8x32xf32>
    %143 = vector.extract_strided_slice %125 {offsets = [0, 64], sizes = [8, 32], strides = [1, 1]} : vector<8x96xf32> to vector<8x32xf32>
    %144 = arith.mulf %133, %143 : vector<8x32xf32>
    %145 = arith.addf %142, %144 : vector<8x32xf32>
    %146 = math.tanh %145 : vector<8x32xf32>
    %cst_44 = arith.constant 1.000000e+00 : f32
    %147 = vector.broadcast %cst_44 : f32 to vector<8x32xf32>
    %148 = arith.subf %147, %141 : vector<8x32xf32>
    %149 = arith.mulf %148, %146 : vector<8x32xf32>
    %150 = arith.mulf %141, %115 : vector<8x32xf32>
    %151 = arith.addf %149, %150 : vector<8x32xf32>
    %152 = arith.index_cast %c3_i32 : i32 to index
    %c0_45 = arith.constant 0 : index
    %c0_46 = arith.constant 0 : index
    %153 = vector.load %arg7[%152, %c0_45, %c0_46] : memref<8x8x32xf32, #tpu.memory_space<vmem>>, vector<1x8x32xf32>
    %154 = vector.shape_cast %153 : vector<1x8x32xf32> to vector<8x32xf32>
    %155 = vector.shape_cast %151 : vector<8x32xf32> to vector<1x8x32xf32>
    tpu.vector_store %arg7[%152, %c0_45, %c0_46], %155 {strides = array<i32>} : memref<8x8x32xf32, #tpu.memory_space<vmem>>, vector<1x8x32xf32>,
    %c4_i32 = arith.constant 4 : i32
    %156 = arith.index_cast %c4_i32 : i32 to index
    %c0_47 = arith.constant 0 : index
    %c0_48 = arith.constant 0 : index
    %157 = vector.load %arg9[%156, %c0_47, %c0_48] : memref<8x8x96xf32, #tpu.memory_space<vmem>>, vector<1x8x96xf32>
    %158 = vector.shape_cast %157 : vector<1x8x96xf32> to vector<8x96xf32>
    %cst_49 = arith.constant dense<0.000000e+00> : vector<8x96xf32>
    %159 = tpu.matmul %151, %9, %cst_49 {dimension_numbers = #tpu.dot_dimension_numbers<[1], [0], [0], [1], [0, 0, 1, 1], [], []>} : vector<8x32xf32>, vector<32x96xf32>, vector<8x96xf32> -> vector<8x96xf32>
    %160 = vector.broadcast %10 : vector<1x96xf32> to vector<8x96xf32>
    %161 = arith.addf %159, %160 : vector<8x96xf32>
    %162 = vector.extract_strided_slice %158 {offsets = [0, 0], sizes = [8, 32], strides = [1, 1]} : vector<8x96xf32> to vector<8x32xf32>
    %163 = vector.extract_strided_slice %161 {offsets = [0, 0], sizes = [8, 32], strides = [1, 1]} : vector<8x96xf32> to vector<8x32xf32>
    %164 = arith.addf %162, %163 : vector<8x32xf32>
    %165 = arith.negf %164 : vector<8x32xf32>
    %166 = math.exp %165 : vector<8x32xf32>
    %cst_50 = arith.constant 1.000000e+00 : f32
    %167 = vector.broadcast %cst_50 : f32 to vector<8x32xf32>
    %168 = arith.addf %167, %166 : vector<8x32xf32>
    %169 = arith.divf %167, %168 : vector<8x32xf32>
    %170 = vector.extract_strided_slice %158 {offsets = [0, 32], sizes = [8, 32], strides = [1, 1]} : vector<8x96xf32> to vector<8x32xf32>
    %171 = vector.extract_strided_slice %161 {offsets = [0, 32], sizes = [8, 32], strides = [1, 1]} : vector<8x96xf32> to vector<8x32xf32>
    %172 = arith.addf %170, %171 : vector<8x32xf32>
    %173 = arith.negf %172 : vector<8x32xf32>
    %174 = math.exp %173 : vector<8x32xf32>
    %cst_51 = arith.constant 1.000000e+00 : f32
    %175 = vector.broadcast %cst_51 : f32 to vector<8x32xf32>
    %176 = arith.addf %175, %174 : vector<8x32xf32>
    %177 = arith.divf %175, %176 : vector<8x32xf32>
    %178 = vector.extract_strided_slice %158 {offsets = [0, 64], sizes = [8, 32], strides = [1, 1]} : vector<8x96xf32> to vector<8x32xf32>
    %179 = vector.extract_strided_slice %161 {offsets = [0, 64], sizes = [8, 32], strides = [1, 1]} : vector<8x96xf32> to vector<8x32xf32>
    %180 = arith.mulf %169, %179 : vector<8x32xf32>
    %181 = arith.addf %178, %180 : vector<8x32xf32>
    %182 = math.tanh %181 : vector<8x32xf32>
    %cst_52 = arith.constant 1.000000e+00 : f32
    %183 = vector.broadcast %cst_52 : f32 to vector<8x32xf32>
    %184 = arith.subf %183, %177 : vector<8x32xf32>
    %185 = arith.mulf %184, %182 : vector<8x32xf32>
    %186 = arith.mulf %177, %151 : vector<8x32xf32>
    %187 = arith.addf %185, %186 : vector<8x32xf32>
    %188 = arith.index_cast %c4_i32 : i32 to index
    %c0_53 = arith.constant 0 : index
    %c0_54 = arith.constant 0 : index
    %189 = vector.load %arg7[%188, %c0_53, %c0_54] : memref<8x8x32xf32, #tpu.memory_space<vmem>>, vector<1x8x32xf32>
    %190 = vector.shape_cast %189 : vector<1x8x32xf32> to vector<8x32xf32>
    %191 = vector.shape_cast %187 : vector<8x32xf32> to vector<1x8x32xf32>
    tpu.vector_store %arg7[%188, %c0_53, %c0_54], %191 {strides = array<i32>} : memref<8x8x32xf32, #tpu.memory_space<vmem>>, vector<1x8x32xf32>,
    %c5_i32 = arith.constant 5 : i32
    %192 = arith.index_cast %c5_i32 : i32 to index
    %c0_55 = arith.constant 0 : index
    %c0_56 = arith.constant 0 : index
    %193 = vector.load %arg9[%192, %c0_55, %c0_56] : memref<8x8x96xf32, #tpu.memory_space<vmem>>, vector<1x8x96xf32>
    %194 = vector.shape_cast %193 : vector<1x8x96xf32> to vector<8x96xf32>
    %cst_57 = arith.constant dense<0.000000e+00> : vector<8x96xf32>
    %195 = tpu.matmul %187, %9, %cst_57 {dimension_numbers = #tpu.dot_dimension_numbers<[1], [0], [0], [1], [0, 0, 1, 1], [], []>} : vector<8x32xf32>, vector<32x96xf32>, vector<8x96xf32> -> vector<8x96xf32>
    %196 = vector.broadcast %10 : vector<1x96xf32> to vector<8x96xf32>
    %197 = arith.addf %195, %196 : vector<8x96xf32>
    %198 = vector.extract_strided_slice %194 {offsets = [0, 0], sizes = [8, 32], strides = [1, 1]} : vector<8x96xf32> to vector<8x32xf32>
    %199 = vector.extract_strided_slice %197 {offsets = [0, 0], sizes = [8, 32], strides = [1, 1]} : vector<8x96xf32> to vector<8x32xf32>
    %200 = arith.addf %198, %199 : vector<8x32xf32>
    %201 = arith.negf %200 : vector<8x32xf32>
    %202 = math.exp %201 : vector<8x32xf32>
    %cst_58 = arith.constant 1.000000e+00 : f32
    %203 = vector.broadcast %cst_58 : f32 to vector<8x32xf32>
    %204 = arith.addf %203, %202 : vector<8x32xf32>
    %205 = arith.divf %203, %204 : vector<8x32xf32>
    %206 = vector.extract_strided_slice %194 {offsets = [0, 32], sizes = [8, 32], strides = [1, 1]} : vector<8x96xf32> to vector<8x32xf32>
    %207 = vector.extract_strided_slice %197 {offsets = [0, 32], sizes = [8, 32], strides = [1, 1]} : vector<8x96xf32> to vector<8x32xf32>
    %208 = arith.addf %206, %207 : vector<8x32xf32>
    %209 = arith.negf %208 : vector<8x32xf32>
    %210 = math.exp %209 : vector<8x32xf32>
    %cst_59 = arith.constant 1.000000e+00 : f32
    %211 = vector.broadcast %cst_59 : f32 to vector<8x32xf32>
    %212 = arith.addf %211, %210 : vector<8x32xf32>
    %213 = arith.divf %211, %212 : vector<8x32xf32>
    %214 = vector.extract_strided_slice %194 {offsets = [0, 64], sizes = [8, 32], strides = [1, 1]} : vector<8x96xf32> to vector<8x32xf32>
    %215 = vector.extract_strided_slice %197 {offsets = [0, 64], sizes = [8, 32], strides = [1, 1]} : vector<8x96xf32> to vector<8x32xf32>
    %216 = arith.mulf %205, %215 : vector<8x32xf32>
    %217 = arith.addf %214, %216 : vector<8x32xf32>
    %218 = math.tanh %217 : vector<8x32xf32>
    %cst_60 = arith.constant 1.000000e+00 : f32
    %219 = vector.broadcast %cst_60 : f32 to vector<8x32xf32>
    %220 = arith.subf %219, %213 : vector<8x32xf32>
    %221 = arith.mulf %220, %218 : vector<8x32xf32>
    %222 = arith.mulf %213, %187 : vector<8x32xf32>
    %223 = arith.addf %221, %222 : vector<8x32xf32>
    %224 = arith.index_cast %c5_i32 : i32 to index
    %c0_61 = arith.constant 0 : index
    %c0_62 = arith.constant 0 : index
    %225 = vector.load %arg7[%224, %c0_61, %c0_62] : memref<8x8x32xf32, #tpu.memory_space<vmem>>, vector<1x8x32xf32>
    %226 = vector.shape_cast %225 : vector<1x8x32xf32> to vector<8x32xf32>
    %227 = vector.shape_cast %223 : vector<8x32xf32> to vector<1x8x32xf32>
    tpu.vector_store %arg7[%224, %c0_61, %c0_62], %227 {strides = array<i32>} : memref<8x8x32xf32, #tpu.memory_space<vmem>>, vector<1x8x32xf32>,
    %c6_i32 = arith.constant 6 : i32
    %228 = arith.index_cast %c6_i32 : i32 to index
    %c0_63 = arith.constant 0 : index
    %c0_64 = arith.constant 0 : index
    %229 = vector.load %arg9[%228, %c0_63, %c0_64] : memref<8x8x96xf32, #tpu.memory_space<vmem>>, vector<1x8x96xf32>
    %230 = vector.shape_cast %229 : vector<1x8x96xf32> to vector<8x96xf32>
    %cst_65 = arith.constant dense<0.000000e+00> : vector<8x96xf32>
    %231 = tpu.matmul %223, %9, %cst_65 {dimension_numbers = #tpu.dot_dimension_numbers<[1], [0], [0], [1], [0, 0, 1, 1], [], []>} : vector<8x32xf32>, vector<32x96xf32>, vector<8x96xf32> -> vector<8x96xf32>
    %232 = vector.broadcast %10 : vector<1x96xf32> to vector<8x96xf32>
    %233 = arith.addf %231, %232 : vector<8x96xf32>
    %234 = vector.extract_strided_slice %230 {offsets = [0, 0], sizes = [8, 32], strides = [1, 1]} : vector<8x96xf32> to vector<8x32xf32>
    %235 = vector.extract_strided_slice %233 {offsets = [0, 0], sizes = [8, 32], strides = [1, 1]} : vector<8x96xf32> to vector<8x32xf32>
    %236 = arith.addf %234, %235 : vector<8x32xf32>
    %237 = arith.negf %236 : vector<8x32xf32>
    %238 = math.exp %237 : vector<8x32xf32>
    %cst_66 = arith.constant 1.000000e+00 : f32
    %239 = vector.broadcast %cst_66 : f32 to vector<8x32xf32>
    %240 = arith.addf %239, %238 : vector<8x32xf32>
    %241 = arith.divf %239, %240 : vector<8x32xf32>
    %242 = vector.extract_strided_slice %230 {offsets = [0, 32], sizes = [8, 32], strides = [1, 1]} : vector<8x96xf32> to vector<8x32xf32>
    %243 = vector.extract_strided_slice %233 {offsets = [0, 32], sizes = [8, 32], strides = [1, 1]} : vector<8x96xf32> to vector<8x32xf32>
    %244 = arith.addf %242, %243 : vector<8x32xf32>
    %245 = arith.negf %244 : vector<8x32xf32>
    %246 = math.exp %245 : vector<8x32xf32>
    %cst_67 = arith.constant 1.000000e+00 : f32
    %247 = vector.broadcast %cst_67 : f32 to vector<8x32xf32>
    %248 = arith.addf %247, %246 : vector<8x32xf32>
    %249 = arith.divf %247, %248 : vector<8x32xf32>
    %250 = vector.extract_strided_slice %230 {offsets = [0, 64], sizes = [8, 32], strides = [1, 1]} : vector<8x96xf32> to vector<8x32xf32>
    %251 = vector.extract_strided_slice %233 {offsets = [0, 64], sizes = [8, 32], strides = [1, 1]} : vector<8x96xf32> to vector<8x32xf32>
    %252 = arith.mulf %241, %251 : vector<8x32xf32>
    %253 = arith.addf %250, %252 : vector<8x32xf32>
    %254 = math.tanh %253 : vector<8x32xf32>
    %cst_68 = arith.constant 1.000000e+00 : f32
    %255 = vector.broadcast %cst_68 : f32 to vector<8x32xf32>
    %256 = arith.subf %255, %249 : vector<8x32xf32>
    %257 = arith.mulf %256, %254 : vector<8x32xf32>
    %258 = arith.mulf %249, %223 : vector<8x32xf32>
    %259 = arith.addf %257, %258 : vector<8x32xf32>
    %260 = arith.index_cast %c6_i32 : i32 to index
    %c0_69 = arith.constant 0 : index
    %c0_70 = arith.constant 0 : index
    %261 = vector.load %arg7[%260, %c0_69, %c0_70] : memref<8x8x32xf32, #tpu.memory_space<vmem>>, vector<1x8x32xf32>
    %262 = vector.shape_cast %261 : vector<1x8x32xf32> to vector<8x32xf32>
    %263 = vector.shape_cast %259 : vector<8x32xf32> to vector<1x8x32xf32>
    tpu.vector_store %arg7[%260, %c0_69, %c0_70], %263 {strides = array<i32>} : memref<8x8x32xf32, #tpu.memory_space<vmem>>, vector<1x8x32xf32>,
    %c7_i32 = arith.constant 7 : i32
    %264 = arith.index_cast %c7_i32 : i32 to index
    %c0_71 = arith.constant 0 : index
    %c0_72 = arith.constant 0 : index
    %265 = vector.load %arg9[%264, %c0_71, %c0_72] : memref<8x8x96xf32, #tpu.memory_space<vmem>>, vector<1x8x96xf32>
    %266 = vector.shape_cast %265 : vector<1x8x96xf32> to vector<8x96xf32>
    %cst_73 = arith.constant dense<0.000000e+00> : vector<8x96xf32>
    %267 = tpu.matmul %259, %9, %cst_73 {dimension_numbers = #tpu.dot_dimension_numbers<[1], [0], [0], [1], [0, 0, 1, 1], [], []>} : vector<8x32xf32>, vector<32x96xf32>, vector<8x96xf32> -> vector<8x96xf32>
    %268 = vector.broadcast %10 : vector<1x96xf32> to vector<8x96xf32>
    %269 = arith.addf %267, %268 : vector<8x96xf32>
    %270 = vector.extract_strided_slice %266 {offsets = [0, 0], sizes = [8, 32], strides = [1, 1]} : vector<8x96xf32> to vector<8x32xf32>
    %271 = vector.extract_strided_slice %269 {offsets = [0, 0], sizes = [8, 32], strides = [1, 1]} : vector<8x96xf32> to vector<8x32xf32>
    %272 = arith.addf %270, %271 : vector<8x32xf32>
    %273 = arith.negf %272 : vector<8x32xf32>
    %274 = math.exp %273 : vector<8x32xf32>
    %cst_74 = arith.constant 1.000000e+00 : f32
    %275 = vector.broadcast %cst_74 : f32 to vector<8x32xf32>
    %276 = arith.addf %275, %274 : vector<8x32xf32>
    %277 = arith.divf %275, %276 : vector<8x32xf32>
    %278 = vector.extract_strided_slice %266 {offsets = [0, 32], sizes = [8, 32], strides = [1, 1]} : vector<8x96xf32> to vector<8x32xf32>
    %279 = vector.extract_strided_slice %269 {offsets = [0, 32], sizes = [8, 32], strides = [1, 1]} : vector<8x96xf32> to vector<8x32xf32>
    %280 = arith.addf %278, %279 : vector<8x32xf32>
    %281 = arith.negf %280 : vector<8x32xf32>
    %282 = math.exp %281 : vector<8x32xf32>
    %cst_75 = arith.constant 1.000000e+00 : f32
    %283 = vector.broadcast %cst_75 : f32 to vector<8x32xf32>
    %284 = arith.addf %283, %282 : vector<8x32xf32>
    %285 = arith.divf %283, %284 : vector<8x32xf32>
    %286 = vector.extract_strided_slice %266 {offsets = [0, 64], sizes = [8, 32], strides = [1, 1]} : vector<8x96xf32> to vector<8x32xf32>
    %287 = vector.extract_strided_slice %269 {offsets = [0, 64], sizes = [8, 32], strides = [1, 1]} : vector<8x96xf32> to vector<8x32xf32>
    %288 = arith.mulf %277, %287 : vector<8x32xf32>
    %289 = arith.addf %286, %288 : vector<8x32xf32>
    %290 = math.tanh %289 : vector<8x32xf32>
    %cst_76 = arith.constant 1.000000e+00 : f32
    %291 = vector.broadcast %cst_76 : f32 to vector<8x32xf32>
    %292 = arith.subf %291, %285 : vector<8x32xf32>
    %293 = arith.mulf %292, %290 : vector<8x32xf32>
    %294 = arith.mulf %285, %259 : vector<8x32xf32>
    %295 = arith.addf %293, %294 : vector<8x32xf32>
    %296 = arith.index_cast %c7_i32 : i32 to index
    %c0_77 = arith.constant 0 : index
    %c0_78 = arith.constant 0 : index
    %297 = vector.load %arg7[%296, %c0_77, %c0_78] : memref<8x8x32xf32, #tpu.memory_space<vmem>>, vector<1x8x32xf32>
    %298 = vector.shape_cast %297 : vector<1x8x32xf32> to vector<8x32xf32>
    %299 = vector.shape_cast %295 : vector<8x32xf32> to vector<1x8x32xf32>
    tpu.vector_store %arg7[%296, %c0_77, %c0_78], %299 {strides = array<i32>} : memref<8x8x32xf32, #tpu.memory_space<vmem>>, vector<1x8x32xf32>,
    %c8_i32 = arith.constant 8 : i32
    %c0_79 = arith.constant 0 : index
    %c0_80 = arith.constant 0 : index
    %300 = vector.load %arg8[%c0_79, %c0_80] : memref<8x32xf32, #tpu.memory_space<vmem>>, vector<8x32xf32>
    tpu.vector_store %arg8[%c0_79, %c0_80], %295 {strides = array<i32>} : memref<8x32xf32, #tpu.memory_space<vmem>>, vector<8x32xf32>,
    return
  }
  func.func @transform_0(%arg0: i32) -> (i32, i32, i32) {
    %c0_i32 = arith.constant 0 : i32
    %c0_i32_0 = arith.constant 0 : i32
    %c0_i32_1 = arith.constant 0 : i32
    %c0_i32_2 = arith.constant 0 : i32
    return %c0_i32, %c0_i32_0, %c0_i32_1 : i32, i32, i32
  }
  func.func @transform_1(%arg0: i32) -> (i32, i32) {
    %c0_i32 = arith.constant 0 : i32
    %c0_i32_0 = arith.constant 0 : i32
    %c0_i32_1 = arith.constant 0 : i32
    return %c0_i32, %c0_i32_0 : i32, i32
  }
  func.func @transform_2(%arg0: i32) -> (i32, i32) {
    %c0_i32 = arith.constant 0 : i32
    %c0_i32_0 = arith.constant 0 : i32
    %c0_i32_1 = arith.constant 0 : i32
    return %c0_i32, %c0_i32_0 : i32, i32
  }
  func.func @transform_3(%arg0: i32) -> (i32, i32) {
    %c0_i32 = arith.constant 0 : i32
    %c0_i32_0 = arith.constant 0 : i32
    %c0_i32_1 = arith.constant 0 : i32
    return %c0_i32, %c0_i32_0 : i32, i32
  }
  func.func @transform_4(%arg0: i32) -> (i32, i32) {
    %c0_i32 = arith.constant 0 : i32
    %c0_i32_0 = arith.constant 0 : i32
    %c0_i32_1 = arith.constant 0 : i32
    return %c0_i32, %c0_i32_0 : i32, i32
  }
  func.func @transform_5(%arg0: i32) -> (i32, i32) {
    %c0_i32 = arith.constant 0 : i32
    %c0_i32_0 = arith.constant 0 : i32
    %c0_i32_1 = arith.constant 0 : i32
    return %c0_i32, %c0_i32_0 : i32, i32
  }
  func.func @transform_6(%arg0: i32) -> (i32, i32, i32) {
    %c0_i32 = arith.constant 0 : i32
    %c0_i32_0 = arith.constant 0 : i32
    %c0_i32_1 = arith.constant 0 : i32
    %c0_i32_2 = arith.constant 0 : i32
    return %c0_i32, %c0_i32_0, %c0_i32_1 : i32, i32, i32
  }
  func.func @transform_7(%arg0: i32) -> (i32, i32) {
    %c0_i32 = arith.constant 0 : i32
    %c0_i32_0 = arith.constant 0 : i32
    %c0_i32_1 = arith.constant 0 : i32
    return %c0_i32, %c0_i32_0 : i32, i32
  }
}

module attributes {stable_mosaic.version = 11 : i64} {
  func.func @_attn_proj_kernel(%arg0: i32, %arg1: memref<8x8x32xf32, #tpu.memory_space<vmem>>, %arg2: memref<8x128x32xf32, #tpu.memory_space<vmem>>, %arg3: memref<32x32xf32, #tpu.memory_space<vmem>>, %arg4: memref<32x32xf32, #tpu.memory_space<vmem>>, %arg5: memref<1x32xf32, #tpu.memory_space<vmem>>, %arg6: memref<32x128xf32, #tpu.memory_space<vmem>>, %arg7: memref<1x128xf32, #tpu.memory_space<vmem>>, %arg8: memref<8x8x128xf32, #tpu.memory_space<vmem>>, %arg9: memref<8x8x128xf32, #tpu.memory_space<vmem>>) attributes {dimension_semantics = [#tpu.dimension_semantics<parallel>], iteration_bounds = array<i64: 1>, scalar_prefetch = 0 : i64, scratch_operands = 0 : i64, tpu.core_type = #tpu.core_type<tc>, window_params = [{transform_indices = @transform_0, window_bounds = array<i64: 8, 8, 32>}, {pipeline_mode = #tpu.pipeline_mode<synchronous>, transform_indices = @transform_1, window_bounds = array<i64: 8, 128, 32>}, {pipeline_mode = #tpu.pipeline_mode<synchronous>, transform_indices = @transform_2, window_bounds = array<i64: 32, 32>}, {pipeline_mode = #tpu.pipeline_mode<synchronous>, transform_indices = @transform_3, window_bounds = array<i64: 32, 32>}, {pipeline_mode = #tpu.pipeline_mode<synchronous>, transform_indices = @transform_4, window_bounds = array<i64: 1, 32>}, {pipeline_mode = #tpu.pipeline_mode<synchronous>, transform_indices = @transform_5, window_bounds = array<i64: 32, 128>}, {pipeline_mode = #tpu.pipeline_mode<synchronous>, transform_indices = @transform_6, window_bounds = array<i64: 1, 128>}, {transform_indices = @transform_7, window_bounds = array<i64: 8, 8, 128>}, {transform_indices = @transform_8, window_bounds = array<i64: 8, 8, 128>}]} {
    %c0 = arith.constant 0 : index
    %c0_0 = arith.constant 0 : index
    %c0_1 = arith.constant 0 : index
    %0 = vector.load %arg1[%c0, %c0_0, %c0_1] : memref<8x8x32xf32, #tpu.memory_space<vmem>>, vector<8x8x32xf32>
    %c0_2 = arith.constant 0 : index
    %c0_3 = arith.constant 0 : index
    %c0_4 = arith.constant 0 : index
    %1 = vector.load %arg2[%c0_2, %c0_3, %c0_4] : memref<8x128x32xf32, #tpu.memory_space<vmem>>, vector<8x128x32xf32>
    "tpu.trace_start"() <{level = 10 : i32, message = "bsh,blh->bsl"}> : () -> ()
    %cst = arith.constant dense<0.000000e+00> : vector<8x8x128xf32>
    %2 = tpu.matmul %0, %1, %cst {dimension_numbers = #tpu.dot_dimension_numbers<[2], [2], [1], [1], [0, 0, 0, 1, 1, 1], [0], [0]>} : vector<8x8x32xf32>, vector<8x128x32xf32>, vector<8x8x128xf32> -> vector<8x8x128xf32>
    "tpu.trace_stop"() : () -> ()
    %3 = tpu.iota {dimensions = array<i32: 2>} : vector<8x8x128xi32>
    %c10_i32 = arith.constant 10 : i32
    %4 = vector.broadcast %c10_i32 : i32 to vector<8x8x128xi32>
    %5 = arith.cmpi slt, %3, %4 : vector<8x8x128xi32>
    %cst_5 = arith.constant -1.000000e+30 : f32
    %6 = vector.broadcast %cst_5 : f32 to vector<8x8x128xf32>
    %7 = arith.select %5, %2, %6 : vector<8x8x128xi1>, vector<8x8x128xf32>
    %cst_6 = arith.constant dense<0xFF800000> : vector<8x8xf32>
    %8 = vector.multi_reduction <maximumf>, %7, %cst_6 [2] : vector<8x8x128xf32> to vector<8x8xf32>
    %9 = vector.shape_cast %8 : vector<8x8xf32> to vector<8x8x1xf32>
    %10 = vector.broadcast %9 : vector<8x8x1xf32> to vector<8x8x128xf32>
    %11 = arith.subf %7, %10 : vector<8x8x128xf32>
    %12 = math.exp %11 : vector<8x8x128xf32>
    %cst_7 = arith.constant dense<0.000000e+00> : vector<8x8xf32>
    %13 = vector.multi_reduction <add>, %12, %cst_7 [2] : vector<8x8x128xf32> to vector<8x8xf32>
    %14 = vector.shape_cast %13 : vector<8x8xf32> to vector<8x8x1xf32>
    %15 = vector.broadcast %14 : vector<8x8x1xf32> to vector<8x8x128xf32>
    %16 = arith.divf %12, %15 : vector<8x8x128xf32>
    "tpu.trace_start"() <{level = 10 : i32, message = "bsl,blh->bsh"}> : () -> ()
    %cst_8 = arith.constant dense<0.000000e+00> : vector<8x8x32xf32>
    %17 = tpu.matmul %16, %1, %cst_8 {dimension_numbers = #tpu.dot_dimension_numbers<[2], [1], [1], [2], [0, 0, 0, 1, 1, 2], [0], [0]>} : vector<8x8x128xf32>, vector<8x128x32xf32>, vector<8x8x32xf32> -> vector<8x8x32xf32>
    "tpu.trace_stop"() : () -> ()
    %18 = vector.shape_cast %0 : vector<8x8x32xf32> to vector<64x32xf32>
    %19 = vector.shape_cast %17 : vector<8x8x32xf32> to vector<64x32xf32>
    %c0_9 = arith.constant 0 : index
    %c0_10 = arith.constant 0 : index
    %20 = vector.load %arg3[%c0_9, %c0_10] : memref<32x32xf32, #tpu.memory_space<vmem>>, vector<32x32xf32>
    %cst_11 = arith.constant dense<0.000000e+00> : vector<64x32xf32>
    %21 = tpu.matmul %19, %20, %cst_11 {dimension_numbers = #tpu.dot_dimension_numbers<[1], [0], [0], [1], [0, 0, 1, 1], [], []>} : vector<64x32xf32>, vector<32x32xf32>, vector<64x32xf32> -> vector<64x32xf32>
    %c0_12 = arith.constant 0 : index
    %c0_13 = arith.constant 0 : index
    %22 = vector.load %arg4[%c0_12, %c0_13] : memref<32x32xf32, #tpu.memory_space<vmem>>, vector<32x32xf32>
    %cst_14 = arith.constant dense<0.000000e+00> : vector<64x32xf32>
    %23 = tpu.matmul %18, %22, %cst_14 {dimension_numbers = #tpu.dot_dimension_numbers<[1], [0], [0], [1], [0, 0, 1, 1], [], []>} : vector<64x32xf32>, vector<32x32xf32>, vector<64x32xf32> -> vector<64x32xf32>
    %24 = arith.addf %21, %23 : vector<64x32xf32>
    %c0_15 = arith.constant 0 : index
    %c0_16 = arith.constant 0 : index
    %25 = vector.load %arg5[%c0_15, %c0_16] : memref<1x32xf32, #tpu.memory_space<vmem>>, vector<1x32xf32>
    %26 = vector.broadcast %25 : vector<1x32xf32> to vector<64x32xf32>
    %27 = arith.addf %24, %26 : vector<64x32xf32>
    %28 = math.tanh %27 : vector<64x32xf32>
    %c0_17 = arith.constant 0 : index
    %c0_18 = arith.constant 0 : index
    %29 = vector.load %arg6[%c0_17, %c0_18] : memref<32x128xf32, #tpu.memory_space<vmem>>, vector<32x128xf32>
    %cst_19 = arith.constant dense<0.000000e+00> : vector<64x128xf32>
    %30 = tpu.matmul %28, %29, %cst_19 {dimension_numbers = #tpu.dot_dimension_numbers<[1], [0], [0], [1], [0, 0, 1, 1], [], []>} : vector<64x32xf32>, vector<32x128xf32>, vector<64x128xf32> -> vector<64x128xf32>
    %c0_20 = arith.constant 0 : index
    %c0_21 = arith.constant 0 : index
    %31 = vector.load %arg7[%c0_20, %c0_21] : memref<1x128xf32, #tpu.memory_space<vmem>>, vector<1x128xf32>
    %32 = vector.broadcast %31 : vector<1x128xf32> to vector<64x128xf32>
    %33 = arith.addf %30, %32 : vector<64x128xf32>
    %cst_22 = arith.constant dense<0xFF800000> : vector<64xf32>
    %34 = vector.multi_reduction <maximumf>, %33, %cst_22 [1] : vector<64x128xf32> to vector<64xf32>
    %35 = vector.shape_cast %34 : vector<64xf32> to vector<64x1xf32>
    %36 = vector.broadcast %35 : vector<64x1xf32> to vector<64x128xf32>
    %37 = arith.subf %33, %36 : vector<64x128xf32>
    %38 = math.exp %37 : vector<64x128xf32>
    %cst_23 = arith.constant dense<0.000000e+00> : vector<64xf32>
    %39 = vector.multi_reduction <add>, %38, %cst_23 [1] : vector<64x128xf32> to vector<64xf32>
    %40 = vector.shape_cast %39 : vector<64xf32> to vector<64x1xf32>
    %41 = math.log %40 : vector<64x1xf32>
    %42 = arith.addf %41, %35 : vector<64x1xf32>
    %43 = vector.broadcast %42 : vector<64x1xf32> to vector<64x128xf32>
    %44 = arith.subf %33, %43 : vector<64x128xf32>
    %45 = vector.shape_cast %44 : vector<64x128xf32> to vector<8x8x128xf32>
    %c0_24 = arith.constant 0 : index
    %c0_25 = arith.constant 0 : index
    %c0_26 = arith.constant 0 : index
    %46 = vector.load %arg8[%c0_24, %c0_25, %c0_26] : memref<8x8x128xf32, #tpu.memory_space<vmem>>, vector<8x8x128xf32>
    tpu.vector_store %arg8[%c0_24, %c0_25, %c0_26], %45 {strides = array<i32>} : memref<8x8x128xf32, #tpu.memory_space<vmem>>, vector<8x8x128xf32>,
    %c0_27 = arith.constant 0 : index
    %c0_28 = arith.constant 0 : index
    %c0_29 = arith.constant 0 : index
    %47 = vector.load %arg9[%c0_27, %c0_28, %c0_29] : memref<8x8x128xf32, #tpu.memory_space<vmem>>, vector<8x8x128xf32>
    tpu.vector_store %arg9[%c0_27, %c0_28, %c0_29], %16 {strides = array<i32>} : memref<8x8x128xf32, #tpu.memory_space<vmem>>, vector<8x8x128xf32>,
    return
  }
  func.func @transform_0(%arg0: i32) -> (i32, i32, i32) {
    %c0_i32 = arith.constant 0 : i32
    %c0_i32_0 = arith.constant 0 : i32
    %c0_i32_1 = arith.constant 0 : i32
    return %c0_i32, %arg0, %c0_i32_0 : i32, i32, i32
  }
  func.func @transform_1(%arg0: i32) -> (i32, i32, i32) {
    %c0_i32 = arith.constant 0 : i32
    %c0_i32_0 = arith.constant 0 : i32
    %c0_i32_1 = arith.constant 0 : i32
    %c0_i32_2 = arith.constant 0 : i32
    return %c0_i32, %c0_i32_0, %c0_i32_1 : i32, i32, i32
  }
  func.func @transform_2(%arg0: i32) -> (i32, i32) {
    %c0_i32 = arith.constant 0 : i32
    %c0_i32_0 = arith.constant 0 : i32
    %c0_i32_1 = arith.constant 0 : i32
    return %c0_i32, %c0_i32_0 : i32, i32
  }
  func.func @transform_3(%arg0: i32) -> (i32, i32) {
    %c0_i32 = arith.constant 0 : i32
    %c0_i32_0 = arith.constant 0 : i32
    %c0_i32_1 = arith.constant 0 : i32
    return %c0_i32, %c0_i32_0 : i32, i32
  }
  func.func @transform_4(%arg0: i32) -> (i32, i32) {
    %c0_i32 = arith.constant 0 : i32
    %c0_i32_0 = arith.constant 0 : i32
    %c0_i32_1 = arith.constant 0 : i32
    return %c0_i32, %c0_i32_0 : i32, i32
  }
  func.func @transform_5(%arg0: i32) -> (i32, i32) {
    %c0_i32 = arith.constant 0 : i32
    %c0_i32_0 = arith.constant 0 : i32
    %c0_i32_1 = arith.constant 0 : i32
    return %c0_i32, %c0_i32_0 : i32, i32
  }
  func.func @transform_6(%arg0: i32) -> (i32, i32) {
    %c0_i32 = arith.constant 0 : i32
    %c0_i32_0 = arith.constant 0 : i32
    %c0_i32_1 = arith.constant 0 : i32
    return %c0_i32, %c0_i32_0 : i32, i32
  }
  func.func @transform_7(%arg0: i32) -> (i32, i32, i32) {
    %c0_i32 = arith.constant 0 : i32
    %c0_i32_0 = arith.constant 0 : i32
    %c0_i32_1 = arith.constant 0 : i32
    return %c0_i32, %arg0, %c0_i32_0 : i32, i32, i32
  }
  func.func @transform_8(%arg0: i32) -> (i32, i32, i32) {
    %c0_i32 = arith.constant 0 : i32
    %c0_i32_0 = arith.constant 0 : i32
    %c0_i32_1 = arith.constant 0 : i32
    return %c0_i32, %arg0, %c0_i32_0 : i32, i32, i32
  }
}

</mosaic_0001>

<bundles_post_ra>
// kernel: decoder_rnn_forward.2
= control target key start
LH: loop header
LB: loop body
LE: loop exit
PB: predicated region body
PF: predicated region fallthrough
CT: control target
= control target key end

     0   :  { %vm42_vm0 = vcmask 130048   ;;  %v1346_v0 = vmov 0.0|0.0   ;;  %vm1347_vm1 = vmmov 0   ;;  %v1348_v4 = vmov 0.0   ;;  %s1351_s20 = smov 32   ;;  %s1607_s2 = inlined_call_operand.vmem [shape: f32[16,96], index: 2, kind: input, shape index: {}]   ;;  %s1608_s4 = inlined_call_operand.vmem [shape: f32[32,96], index: 4, kind: input, shape index: {}]   ;;  %s1609_s0 = inlined_call_operand.vmem [shape: f32[8,8,16], index: 0, kind: input, shape index: {}]   ;;  %s1610_s1 = inlined_call_operand.vmem [shape: f32[8,32], index: 1, kind: input, shape index: {}]   ;;  %s1611_s3 = inlined_call_operand.vmem [shape: f32[1,96], index: 3, kind: input, shape index: {}]   ;;  %s1612_s5 = inlined_call_operand.vmem [shape: f32[1,96], index: 5, kind: input, shape index: {}]   ;;  %s1613_s6 = inlined_call_operand.vmem [shape: f32[8,8,32], index: 6, kind: output, shape index: {0}]   ;;  %s1614_s7 = inlined_call_operand.vmem [shape: f32[8,32], index: 7, kind: output, shape index: {1}]  }
   0x1   :  { %1244 = vmatprep.subr.bf16.mxu1 %v1346_v0  ;;  %v33_v1 = vld [vmem:[%s1607_s2] sm:$0xff]  ;;  %v34_v2 = vld [vmem:[%s1607_s2 + $0x8] sm:$0xff]  ;;  %1160 = vmatprep.mubr.msk.f32.mxu1 %vm1347_vm1, %v1348_v4  ;;  %v183_v9 = vld [vmem:[%s1608_s4 + $0x10] sm:$0xff]  ;;  %vm194_vm2 = vcmask 261120   ;;  %vm172_vm3 = vcmask 785408  }
   0x2   :  { %v181_v3 = vld [vmem:[%s1608_s4] sm:$0xff]  ;;  %v1240_v5 = vpack.c.bf16 %v34_v2, %v33_v1  ;;  %v182_v6 = vld [vmem:[%s1608_s4 + $0x8] sm:$0xff]  ;;  %v184_v10 = vld [vmem:[%s1608_s4 + $0x18] sm:$0xff] }
   0x3   :  { %v25_v7 = vld [vmem:[%s1609_s0] sm:$0xff]  ;;  %v1410_v8 = vpack.c.bf16 %v182_v6, %v181_v3  ;;  %v26_v11 = vld [vmem:[%s1609_s0 + $0x8] sm:$0xff]  ;;  %v1423_v12 = vpack.c.bf16 %v184_v10, %v183_v9  ;;  %v27_v54 = vld [vmem:[%s1609_s0 + $0x10] sm:$0xff] }
   0x4   :  { %1140 = vmatprep.mubr.msk.f32.mxu0 %vm42_vm0, %v25_v7  ;;  %1241 = vmatprep.subr.bf16.mxu0 %v1240_v5  ;;  %v186_v13 = vld [vmem:[%s1610_s1] sm:$0xff]  ;;  %v28_v55 = vld [vmem:[%s1609_s0 + $0x18] sm:$0xff]  ;;  %v30_v57 = vld [vmem:[%s1609_s0 + $0x28] sm:$0xff] }
   0x5   :  { %1246 = vmatpush3.bf16.msra.mxu1 %v1410_v8  ;;  %1243 = vmatpush3.bf16.msra.mxu0 %v1240_v5  ;;  %v1447_v14 = vld [vmem:[%s1611_s3] ss:$0 sm:$0xff]  ;;  %s1349_s3 = smov 64   ;;  %v31_v58 = vld [vmem:[%s1609_s0 + $0x30] sm:$0xff]  ;;  %v32_v59 = vld [vmem:[%s1609_s0 + $0x38] sm:$0xff] }
   0x6   :  { %1247 = vmatprep.subr.bf16.mxu1 %v1346_v0  ;;  %1256 = vmatprep.subr.bf16.mxu0 %v1346_v0  ;;  %v1454_v19 = vld [vmem:[%s1612_s5] ss:$0 sm:$0xff]  ;;  %s1350_s5 = smov 96  }
   0x7   :  { %v29_v56 = vld [vmem:[%s1609_s0 + $0x20] sm:$0xff] }
   0x8   :  { %1141 = vmatmul.mubr.msk.f32.vlgmr.msra.gmra.mrb[0].mxu0 %vm42_vm0, %v26_v11 }
   0x9   :  { %1249 = vmatpush3.bf16.msra.mxu1 %v1423_v12  ;;  %1258 = vmatpush3.bf16.msra.mxu0 %v1410_v8 }
   0xa   :  { %1250 = vmatprep.subr.bf16.mxu1 %v1346_v0  ;;  %1259 = vmatprep.subr.bf16.mxu0 %v1346_v0 }
   0xb   :  { %1143 = vmatprep.mubr.msk.f32.mxu0 %vm42_vm0, %v27_v54 }
   0xc   :  { %1161 = vmatmul.mubr.msk.f32.vlgmr.msra.gmra.mrb[0].mxu1 %vm194_vm2, %v186_v13  ;;  %1144 = vmatmul.mubr.msk.f32.gmra.mrb[2].mxu0 %vm42_vm0, %v28_v55 }
   0xd   :  { %1252 = vmatpush3.bf16.msra.mxu1 %v1410_v8  ;;  %1171 = vmatprep.mubr.msk.f32.mxu1 %vm1347_vm1, %v1348_v4 }
   0xe   :  { %1253 = vmatprep.subr.bf16.mxu1 %v1346_v0  ;;  %1261 = vmatpush3.bf16.msra.mxu0 %v1423_v12 }
   0xf   :  { %1268 = vmatprep.subr.bf16.mxu0 %v1346_v0  ;;  %1146 = vmatprep.mubr.msk.f32.mxu0 %vm42_vm0, %v29_v56 }
  0x10   :  { %1147 = vmatmul.mubr.msk.f32.gmra.mrb[4].mxu0 %vm42_vm0, %v30_v57 }
  0x11   :  { %1255 = vmatpush3.bf16.msra.mxu1 %v1423_v12  ;;  %1149 = vmatprep.mubr.msk.f32.mxu0 %vm42_vm0, %v31_v58 }
  0x12   :  { %1262 = vmatprep.subr.bf16.mxu1 %v1346_v0 }
  0x14   :  { %1150 = vmatmul.mubr.msk.f32.gmra.mrb[6].mxu0 %vm42_vm0, %v32_v59 }
  0x15   :  { %1182 = vmatprep.mubr.msk.f32.mxu0 %vm1347_vm1, %v1348_v4 }
  0xdb   :  { %v1142_v15 = vpop.f32.mrb[0].mxu0 }
  0xdc   :  { %v139_v16 = vadd.f32 %v1142_v15, %v1447_v14  ;;  %v133_v17 = vpop.f32.mrb[1].mxu0 }
  0xdd   :  { %v134_v18 = vadd.f32 %v1447_v14, %v133_v17 }
  0xde   :  { %174 = vst.msk [vmem:[#allocation2 + $0x8] sm:$0xff] %vm172_vm3, %v139_v16 }
  0xdf   :  { %173 = vst.msk [vmem:[#allocation2] sm:$0xff] %vm172_vm3, %v134_v18  ;;  %v264_v20 = vpop.f32.mrb[0].mxu1  ;;  %v1145_v3 = vpop.f32.mrb[2].mxu0 }
  0xe0   :  { %v265_v21 = vadd.f32 %v1454_v19, %v264_v20  ;;  %v1162_v22 = vpop.f32.mrb[1].mxu1  ;;  %v149_v5 = vadd.f32 %v1145_v3, %v1447_v14  ;;  %v143_v6 = vpop.f32.mrb[3].mxu0 }
  0xe1   :  { %v144_v7 = vadd.f32 %v1447_v14, %v143_v6 }
  0xe2   :  { %276 = vrot.lane.b32.xlu0 %v265_v21, %s1349_s3  ;;  %176 = vst.msk [vmem:[#allocation2 + $0x18] sm:$0xff] %vm172_vm3, %v149_v5 }
  0xe3   :  { %175 = vst.msk [vmem:[#allocation2 + $0x10] sm:$0xff] %vm172_vm3, %v144_v7  ;;  %v1148_v9 = vpop.f32.mrb[4].mxu0 }
  0xe4   :  { %v159_v10 = vadd.f32 %v1148_v9, %v1447_v14  ;;  %v153_v11 = vpop.f32.mrb[5].mxu0 }
  0xe5   :  { %v303_v44 = vld [vmem:[#allocation2 + $0x8] sm:$0xff] }
  0xe6   :  { %v187_v23 = vld [vmem:[#allocation2] sm:$0xff]  ;;  %178 = vst.msk [vmem:[#allocation2 + $0x28] sm:$0xff] %vm172_vm3, %v159_v10 }
  0xe7   :  { %v268_v24 = vadd.f32 %v265_v21, %v187_v23  ;;  %v1151_v15 = vpop.f32.mrb[6].mxu0 }
  0xe8   :  { %v169_v16 = vadd.f32 %v1151_v15, %v1447_v14  ;;  %v163_v17 = vpop.f32.mrb[7].mxu0 }
  0xe9   :  { %v1064_v25 = vmul.f32 -1.442695, %v268_v24  ;;  %v164_v18 = vadd.f32 %v1447_v14, %v163_v17 }
  0xea   :  { %180 = vst.msk [vmem:[#allocation2 + $0x38] sm:$0xff] %vm172_vm3, %v169_v16 }
  0xeb   :  { %1298 = vpow2.f32 %v1064_v25  ;;  %179 = vst.msk [vmem:[#allocation2 + $0x30] sm:$0xff] %vm172_vm3, %v164_v18 }
  0xf5   :  { %v1299_v26 = vpop.eup %1298 }
  0xf6   :  { %v272_v27 = vadd.f32 1.0, %v1299_v26 }
  0xf8   :  { %1300 = vrcp.f32 %v272_v27 }
 0x102   :  { %v1301_v28 = vpop.eup %1300 }
 0x103   :  { %v286_v35 = vsub.f32 1.0, %v1301_v28 }
 0x154   :  { %v277_v29 = vpop.permute.xlu0 %276 }
 0x155   :  { %v279_v30 = vmul.f32 %v1301_v28, %v277_v29 }
 0x157   :  { %281 = vrot.lane.b32.xlu0 %v279_v30, %s1349_s3 }
 0x1c9   :  { %v282_v31 = vpop.permute.xlu0 %281 }
 0x1ca   :  { %v284_v32 = vadd.f32 %v282_v31, %v187_v23  ;;  %v409_v23 = vld [vmem:[#allocation2 + $0x10] sm:$0xff] }
 0x1cc   :  { %1302 = vtanh.f32 %v284_v32 }
 0x1d6   :  { %v1303_v33 = vpop.eup %1302 }
 0x1d7   :  { %288 = vrot.lane.b32.xlu1 %v1303_v33, %s1350_s5 }
 0x1db   :  { %292 = vrot.lane.b32.xlu1 %v186_v13, %s1351_s20  ;;  %v154_v13 = vadd.f32 %v1447_v14, %v153_v11 }
 0x1dd   :  { %177 = vst.msk [vmem:[#allocation2 + $0x20] sm:$0xff] %vm172_vm3, %v154_v13 }
 0x249   :  { %v289_v34 = vpop.permute.xlu1 %288 }
 0x24a   :  { %v291_v37 = vmul.f32 %v289_v34, %v286_v35 }
 0x24d   :  { %v293_v36 = vpop.permute.xlu1 %292 }
 0x24e   :  { %v295_v38 = vmul.f32 %v1301_v28, %v293_v36 }
 0x250   :  { %v296_v39 = vadd.f32 %v295_v38, %v291_v37 }
 0x252   :  { %298 = vrot.lane.b32.xlu0 %v296_v39, %s1350_s5 }
 0x2c4   :  { %v299_v40 = vpop.permute.xlu0 %298 }
 0x2c5   :  { %301 = vst.msk [vmem:[%s1613_s6] sm:$0xff] %vm194_vm2, %v299_v40  ;;  %1172 = vmatmul.mubr.msk.f32.vlgmr.msra.gmra.mrb[2].mxu1 %vm194_vm2, %v299_v40 }
 0x2c6   :  { %1264 = vmatpush3.bf16.msra.mxu1 %v1410_v8  ;;  %1193 = vmatprep.mubr.msk.f32.mxu1 %vm1347_vm1, %v1348_v4 }
 0x2c7   :  { %1265 = vmatprep.subr.bf16.mxu1 %v1346_v0 }
 0x2ca   :  { %1267 = vmatpush3.bf16.msra.mxu1 %v1423_v12 }
 0x2cb   :  { %1274 = vmatprep.subr.bf16.mxu1 %v1346_v0 }
 0x398   :  { %v372_v41 = vpop.f32.mrb[2].mxu1 }
 0x399   :  { %v373_v42 = vadd.f32 %v1454_v19, %v372_v41  ;;  %v1173_v43 = vpop.f32.mrb[3].mxu1 }
 0x39a   :  { %v515_v43 = vld [vmem:[#allocation2 + $0x18] sm:$0xff] }
 0x39b   :  { %384 = vrot.lane.b32.xlu1 %v373_v42, %s1349_s3  ;;  %v376_v45 = vadd.f32 %v373_v42, %v303_v44 }
 0x39d   :  { %v1066_v46 = vmul.f32 -1.442695, %v376_v45 }
 0x39f   :  { %1304 = vpow2.f32 %v1066_v46 }
 0x3a9   :  { %v1305_v47 = vpop.eup %1304 }
 0x3aa   :  { %v380_v48 = vadd.f32 1.0, %v1305_v47 }
 0x3ac   :  { %1306 = vrcp.f32 %v380_v48 }
 0x3b6   :  { %v1307_v49 = vpop.eup %1306 }
 0x3b7   :  { %v394_v61 = vsub.f32 1.0, %v1307_v49  ;;  %v400_v63 = vmul.f32 %v1307_v49, %v296_v39 }
 0x40d   :  { %v385_v50 = vpop.permute.xlu1 %384 }
 0x40e   :  { %v387_v51 = vmul.f32 %v1307_v49, %v385_v50 }
 0x410   :  { %389 = vrot.lane.b32.xlu0 %v387_v51, %s1349_s3 }
 0x482   :  { %v390_v52 = vpop.permute.xlu0 %389 }
 0x483   :  { %v392_v53 = vadd.f32 %v390_v52, %v303_v44 }
 0x485   :  { %1308 = vtanh.f32 %v392_v53 }
 0x48f   :  { %v1309_v60 = vpop.eup %1308 }
 0x490   :  { %396 = vrot.lane.b32.xlu1 %v1309_v60, %s1350_s5 }
 0x502   :  { %v397_v62 = vpop.permute.xlu1 %396 }
 0x503   :  { %v399_v1 = vmul.f32 %v397_v62, %v394_v61 }
 0x505   :  { %v401_v2 = vadd.f32 %v400_v63, %v399_v1  ;;  %v621_v63 = vld [vmem:[#allocation2 + $0x20] sm:$0xff] }
 0x507   :  { %403 = vrot.lane.b32.xlu0 %v401_v2, %s1350_s5 }
 0x579   :  { %v404_v20 = vpop.permute.xlu0 %403 }
 0x57a   :  { %1067 = vst.msk [vmem:[%s1613_s6 + $0x8] sm:$0xff] %vm194_vm2, %v404_v20  ;;  %1183 = vmatmul.mubr.msk.f32.vlgmr.msra.gmra.mrb[8].mxu0 %vm194_vm2, %v404_v20 }
 0x57b   :  { %1270 = vmatpush3.bf16.msra.mxu0 %v1410_v8  ;;  %1204 = vmatprep.mubr.msk.f32.mxu0 %vm1347_vm1, %v1348_v4 }
 0x57c   :  { %1271 = vmatprep.subr.bf16.mxu0 %v1346_v0 }
 0x57f   :  { %1273 = vmatpush3.bf16.msra.mxu0 %v1423_v12 }
 0x580   :  { %1280 = vmatprep.subr.bf16.mxu0 %v1346_v0 }
 0x64d   :  { %v478_v14 = vpop.f32.mrb[8].mxu0 }
 0x64e   :  { %v479_v21 = vadd.f32 %v1454_v19, %v478_v14  ;;  %v1184_v22 = vpop.f32.mrb[9].mxu0 }
 0x650   :  { %490 = vrot.lane.b32.xlu1 %v479_v21, %s1349_s3  ;;  %v482_v24 = vadd.f32 %v479_v21, %v409_v23 }
 0x652   :  { %v1069_v25 = vmul.f32 -1.442695, %v482_v24  ;;  %v727_v24 = vld [vmem:[#allocation2 + $0x28] sm:$0xff] }
 0x654   :  { %1310 = vpow2.f32 %v1069_v25 }
 0x65e   :  { %v1311_v26 = vpop.eup %1310 }
 0x65f   :  { %v486_v27 = vadd.f32 1.0, %v1311_v26 }
 0x661   :  { %1312 = vrcp.f32 %v486_v27 }
 0x66b   :  { %v1313_v28 = vpop.eup %1312 }
 0x66c   :  { %v500_v34 = vsub.f32 1.0, %v1313_v28  ;;  %v506_v36 = vmul.f32 %v1313_v28, %v401_v2 }
 0x6c2   :  { %v491_v29 = vpop.permute.xlu1 %490 }
 0x6c3   :  { %v493_v30 = vmul.f32 %v1313_v28, %v491_v29 }
 0x6c5   :  { %495 = vrot.lane.b32.xlu0 %v493_v30, %s1349_s3 }
 0x737   :  { %v496_v31 = vpop.permute.xlu0 %495 }
 0x738   :  { %v498_v32 = vadd.f32 %v496_v31, %v409_v23 }
 0x73a   :  { %1314 = vtanh.f32 %v498_v32 }
 0x744   :  { %v1315_v33 = vpop.eup %1314 }
 0x745   :  { %502 = vrot.lane.b32.xlu1 %v1315_v33, %s1350_s5 }
 0x7b7   :  { %v503_v35 = vpop.permute.xlu1 %502 }
 0x7b8   :  { %v505_v37 = vmul.f32 %v503_v35, %v500_v34 }
 0x7ba   :  { %v507_v38 = vadd.f32 %v506_v36, %v505_v37 }
 0x7bc   :  { %509 = vrot.lane.b32.xlu0 %v507_v38, %s1350_s5 }
 0x82e   :  { %v510_v39 = vpop.permute.xlu0 %509 }
 0x82f   :  { %1070 = vst.msk [vmem:[%s1613_s6 + $0x10] sm:$0xff] %vm194_vm2, %v510_v39  ;;  %1194 = vmatmul.mubr.msk.f32.vlgmr.msra.gmra.mrb[4].mxu1 %vm194_vm2, %v510_v39 }
 0x830   :  { %1276 = vmatpush3.bf16.msra.mxu1 %v1410_v8  ;;  %1215 = vmatprep.mubr.msk.f32.mxu1 %vm1347_vm1, %v1348_v4 }
 0x831   :  { %1277 = vmatprep.subr.bf16.mxu1 %v1346_v0 }
 0x834   :  { %1279 = vmatpush3.bf16.msra.mxu1 %v1423_v12 }
 0x835   :  { %1286 = vmatprep.subr.bf16.mxu1 %v1346_v0 }
 0x902   :  { %v584_v40 = vpop.f32.mrb[4].mxu1 }
 0x903   :  { %v585_v41 = vadd.f32 %v1454_v19, %v584_v40  ;;  %v1195_v42 = vpop.f32.mrb[5].mxu1  ;;  %v833_v40 = vld [vmem:[#allocation2 + $0x30] sm:$0xff] }
 0x905   :  { %596 = vrot.lane.b32.xlu1 %v585_v41, %s1349_s3  ;;  %v588_v44 = vadd.f32 %v585_v41, %v515_v43 }
 0x907   :  { %v1072_v45 = vmul.f32 -1.442695, %v588_v44 }
 0x909   :  { %1316 = vpow2.f32 %v1072_v45 }
 0x913   :  { %v1317_v46 = vpop.eup %1316 }
 0x914   :  { %v592_v47 = vadd.f32 1.0, %v1317_v46 }
 0x916   :  { %1318 = vrcp.f32 %v592_v47 }
 0x920   :  { %v1319_v48 = vpop.eup %1318 }
 0x921   :  { %v606_v54 = vsub.f32 1.0, %v1319_v48  ;;  %v612_v56 = vmul.f32 %v1319_v48, %v507_v38 }
 0x977   :  { %v597_v49 = vpop.permute.xlu1 %596 }
 0x978   :  { %v599_v50 = vmul.f32 %v1319_v48, %v597_v49 }
 0x97a   :  { %601 = vrot.lane.b32.xlu0 %v599_v50, %s1349_s3 }
 0x9ec   :  { %v602_v51 = vpop.permute.xlu0 %601 }
 0x9ed   :  { %v604_v52 = vadd.f32 %v602_v51, %v515_v43 }
 0x9ef   :  { %1320 = vtanh.f32 %v604_v52 }
 0x9f9   :  { %v1321_v53 = vpop.eup %1320 }
 0x9fa   :  { %608 = vrot.lane.b32.xlu1 %v1321_v53, %s1350_s5 }
 0xa6c   :  { %v609_v55 = vpop.permute.xlu1 %608 }
 0xa6d   :  { %v611_v57 = vmul.f32 %v609_v55, %v606_v54 }
 0xa6f   :  { %v613_v58 = vadd.f32 %v612_v56, %v611_v57 }
 0xa71   :  { %615 = vrot.lane.b32.xlu0 %v613_v58, %s1350_s5 }
 0xae3   :  { %v616_v59 = vpop.permute.xlu0 %615 }
 0xae4   :  { %1073 = vst.msk [vmem:[%s1613_s6 + $0x18] sm:$0xff] %vm194_vm2, %v616_v59  ;;  %1205 = vmatmul.mubr.msk.f32.vlgmr.msra.gmra.mrb[10].mxu0 %vm194_vm2, %v616_v59 }
 0xae5   :  { %1282 = vmatpush3.bf16.msra.mxu0 %v1410_v8  ;;  %1226 = vmatprep.mubr.msk.f32.mxu0 %vm1347_vm1, %v1348_v4 }
 0xae6   :  { %1283 = vmatprep.subr.bf16.mxu0 %v1346_v0 }
 0xae9   :  { %1285 = vmatpush3.bf16.msra.mxu0 %v1423_v12 }
 0xbb7   :  { %v690_v60 = vpop.f32.mrb[10].mxu0 }
 0xbb8   :  { %v691_v61 = vadd.f32 %v1454_v19, %v690_v60  ;;  %v1206_v62 = vpop.f32.mrb[11].mxu0  ;;  %v939_v60 = vld [vmem:[#allocation2 + $0x38] sm:$0xff] }
 0xbba   :  { %702 = vrot.lane.b32.xlu1 %v691_v61, %s1349_s3  ;;  %v694_v1 = vadd.f32 %v691_v61, %v621_v63 }
 0xbbc   :  { %v1075_v2 = vmul.f32 -1.442695, %v694_v1 }
 0xbbe   :  { %1322 = vpow2.f32 %v1075_v2 }
 0xbc8   :  { %v1323_v3 = vpop.eup %1322 }
 0xbc9   :  { %v698_v5 = vadd.f32 1.0, %v1323_v3 }
 0xbcb   :  { %1324 = vrcp.f32 %v698_v5 }
 0xbd5   :  { %v1325_v6 = vpop.eup %1324 }
 0xbd6   :  { %v712_v15 = vsub.f32 1.0, %v1325_v6  ;;  %v718_v17 = vmul.f32 %v1325_v6, %v613_v58 }
 0xc2c   :  { %v703_v7 = vpop.permute.xlu1 %702 }
 0xc2d   :  { %v705_v9 = vmul.f32 %v1325_v6, %v703_v7 }
 0xc2f   :  { %707 = vrot.lane.b32.xlu0 %v705_v9, %s1349_s3 }
 0xca1   :  { %v708_v10 = vpop.permute.xlu0 %707 }
 0xca2   :  { %v710_v11 = vadd.f32 %v708_v10, %v621_v63 }
 0xca4   :  { %1326 = vtanh.f32 %v710_v11 }
 0xcae   :  { %v1327_v13 = vpop.eup %1326 }
 0xcaf   :  { %714 = vrot.lane.b32.xlu1 %v1327_v13, %s1350_s5 }
 0xd21   :  { %v715_v16 = vpop.permute.xlu1 %714 }
 0xd22   :  { %v717_v18 = vmul.f32 %v715_v16, %v712_v15 }
 0xd24   :  { %v719_v20 = vadd.f32 %v718_v17, %v717_v18 }
 0xd26   :  { %721 = vrot.lane.b32.xlu0 %v719_v20, %s1350_s5 }
 0xd98   :  { %v722_v14 = vpop.permute.xlu0 %721 }
 0xd99   :  { %1076 = vst.msk [vmem:[%s1613_s6 + $0x20] sm:$0xff] %vm194_vm2, %v722_v14  ;;  %1216 = vmatmul.mubr.msk.f32.vlgmr.msra.gmra.mrb[6].mxu1 %vm194_vm2, %v722_v14 }
 0xd9a   :  { %1288 = vmatpush3.bf16.msra.mxu1 %v1410_v8  ;;  %1237 = vmatprep.mubr.msk.f32.mxu1 %vm1347_vm1, %v1348_v4 }
 0xd9b   :  { %1289 = vmatprep.subr.bf16.mxu1 %v1346_v0 }
 0xd9e   :  { %1291 = vmatpush3.bf16.msra.mxu1 %v1423_v12 }
 0xe6c   :  { %v796_v21 = vpop.f32.mrb[6].mxu1 }
 0xe6d   :  { %v797_v22 = vadd.f32 %v1454_v19, %v796_v21  ;;  %v1217_v23 = vpop.f32.mrb[7].mxu1 }
 0xe6f   :  { %808 = vrot.lane.b32.xlu1 %v797_v22, %s1349_s3  ;;  %v800_v25 = vadd.f32 %v797_v22, %v727_v24 }
 0xe71   :  { %v1078_v26 = vmul.f32 -1.442695, %v800_v25 }
 0xe73   :  { %1328 = vpow2.f32 %v1078_v26 }
 0xe7d   :  { %v1329_v27 = vpop.eup %1328 }
 0xe7e   :  { %v804_v28 = vadd.f32 1.0, %v1329_v27 }
 0xe80   :  { %1330 = vrcp.f32 %v804_v28 }
 0xe8a   :  { %v1331_v8 = vpop.eup %1330 }
 0xe8b   :  { %v818_v31 = vsub.f32 1.0, %v1331_v8  ;;  %v824_v33 = vmul.f32 %v1331_v8, %v719_v20 }
 0xee1   :  { %v809_v29 = vpop.permute.xlu1 %808 }
 0xee2   :  { %v811_v4 = vmul.f32 %v1331_v8, %v809_v29 }
 0xee4   :  { %813 = vrot.lane.b32.xlu0 %v811_v4, %s1349_s3 }
 0xf56   :  { %v814_v0 = vpop.permute.xlu0 %813 }
 0xf57   :  { %v816_v12 = vadd.f32 %v814_v0, %v727_v24 }
 0xf59   :  { %1332 = vtanh.f32 %v816_v12 }
 0xf63   :  { %v1333_v30 = vpop.eup %1332 }
 0xf64   :  { %820 = vrot.lane.b32.xlu1 %v1333_v30, %s1350_s5 }
 0xfd6   :  { %v821_v32 = vpop.permute.xlu1 %820 }
 0xfd7   :  { %v823_v34 = vmul.f32 %v821_v32, %v818_v31 }
 0xfd9   :  { %v825_v35 = vadd.f32 %v824_v33, %v823_v34 }
 0xfdb   :  { %827 = vrot.lane.b32.xlu0 %v825_v35, %s1350_s5 }
0x104d   :  { %v828_v36 = vpop.permute.xlu0 %827 }
0x104e   :  { %1079 = vst.msk [vmem:[%s1613_s6 + $0x28] sm:$0xff] %vm194_vm2, %v828_v36  ;;  %1227 = vmatmul.mubr.msk.f32.vlgmr.msra.gmra.mrb[12].mxu0 %vm194_vm2, %v828_v36 }
0x1121   :  { %v902_v37 = vpop.f32.mrb[12].mxu0 }
0x1122   :  { %v903_v38 = vadd.f32 %v1454_v19, %v902_v37  ;;  %v1228_v39 = vpop.f32.mrb[13].mxu0 }
0x1124   :  { %914 = vrot.lane.b32.xlu1 %v903_v38, %s1349_s3  ;;  %v906_v41 = vadd.f32 %v903_v38, %v833_v40 }
0x1126   :  { %v1081_v42 = vmul.f32 -1.442695, %v906_v41 }
0x1128   :  { %1334 = vpow2.f32 %v1081_v42 }
0x1132   :  { %v1335_v43 = vpop.eup %1334 }
0x1133   :  { %v910_v44 = vadd.f32 1.0, %v1335_v43 }
0x1135   :  { %1336 = vrcp.f32 %v910_v44 }
0x113f   :  { %v1337_v45 = vpop.eup %1336 }
0x1140   :  { %v924_v51 = vsub.f32 1.0, %v1337_v45  ;;  %v930_v53 = vmul.f32 %v1337_v45, %v825_v35 }
0x1196   :  { %v915_v46 = vpop.permute.xlu1 %914 }
0x1197   :  { %v917_v47 = vmul.f32 %v1337_v45, %v915_v46 }
0x1199   :  { %919 = vrot.lane.b32.xlu0 %v917_v47, %s1349_s3 }
0x120b   :  { %v920_v48 = vpop.permute.xlu0 %919 }
0x120c   :  { %v922_v49 = vadd.f32 %v920_v48, %v833_v40 }
0x120e   :  { %1338 = vtanh.f32 %v922_v49 }
0x1218   :  { %v1339_v50 = vpop.eup %1338 }
0x1219   :  { %926 = vrot.lane.b32.xlu1 %v1339_v50, %s1350_s5 }
0x128b   :  { %v927_v52 = vpop.permute.xlu1 %926 }
0x128c   :  { %v929_v54 = vmul.f32 %v927_v52, %v924_v51 }
0x128e   :  { %v931_v55 = vadd.f32 %v930_v53, %v929_v54 }
0x1290   :  { %933 = vrot.lane.b32.xlu0 %v931_v55, %s1350_s5 }
0x1302   :  { %v934_v56 = vpop.permute.xlu0 %933 }
0x1303   :  { %1082 = vst.msk [vmem:[%s1613_s6 + $0x30] sm:$0xff] %vm194_vm2, %v934_v56  ;;  %1238 = vmatmul.mubr.msk.f32.vlgmr.msra.gmra.mrb[8].mxu1 %vm194_vm2, %v934_v56 }
0x13d6   :  { %v1008_v57 = vpop.f32.mrb[8].mxu1 }
0x13d7   :  { %v1009_v58 = vadd.f32 %v1454_v19, %v1008_v57  ;;  %v1239_v59 = vpop.f32.mrb[9].mxu1 }
0x13d9   :  { %1020 = vrot.lane.b32.xlu1 %v1009_v58, %s1349_s3  ;;  %v1012_v61 = vadd.f32 %v1009_v58, %v939_v60 }
0x13db   :  { %v1084_v62 = vmul.f32 -1.442695, %v1012_v61 }
0x13dd   :  { %1340 = vpow2.f32 %v1084_v62 }
0x13e7   :  { %v1341_v63 = vpop.eup %1340 }
0x13e8   :  { %v1016_v1 = vadd.f32 1.0, %v1341_v63 }
0x13ea   :  { %1342 = vrcp.f32 %v1016_v1 }
0x13f4   :  { %v1343_v2 = vpop.eup %1342 }
0x13f5   :  { %v1030_v19 = vsub.f32 1.0, %v1343_v2  ;;  %v1036_v11 = vmul.f32 %v1343_v2, %v931_v55 }
0x144b   :  { %v1021_v3 = vpop.permute.xlu1 %1020 }
0x144c   :  { %v1023_v5 = vmul.f32 %v1343_v2, %v1021_v3 }
0x144e   :  { %1025 = vrot.lane.b32.xlu0 %v1023_v5, %s1349_s3 }
0x14c0   :  { %v1026_v6 = vpop.permute.xlu0 %1025 }
0x14c1   :  { %v1028_v7 = vadd.f32 %v1026_v6, %v939_v60 }
0x14c3   :  { %1344 = vtanh.f32 %v1028_v7 }
0x14cd   :  { %v1345_v9 = vpop.eup %1344 }
0x14ce   :  { %1032 = vrot.lane.b32.xlu1 %v1345_v9, %s1350_s5 }
0x1540   :  { %v1033_v10 = vpop.permute.xlu1 %1032 }
0x1541   :  { %v1035_v13 = vmul.f32 %v1033_v10, %v1030_v19 }
0x1543   :  { %v1037_v15 = vadd.f32 %v1036_v11, %v1035_v13 }
0x1545   :  { %1039 = vrot.lane.b32.xlu0 %v1037_v15, %s1350_s5 }
0x15b7   :  { %v1040_v16 = vpop.permute.xlu0 %1039 }
0x15b8   :  { %1085 = vst.msk [vmem:[%s1613_s6 + $0x38] sm:$0xff] %vm194_vm2, %v1040_v16  ;;  %1044 = vst.msk [vmem:[%s1614_s7] sm:$0xff] %vm194_vm2, %v1040_v16 }

// kernel: decoder_rnn_forward.3
= control target key start
LH: loop header
LB: loop body
LE: loop exit
PB: predicated region body
PF: predicated region fallthrough
CT: control target
= control target key end

     0   :  { %vm164_vm0 = vcmask 261120   ;;  %v5231_v0 = vmov 0.0|0.0   ;;  %vm3953_vm2 = vmmov 0   ;;  %v5218_v7 = vmov 0.0   ;;  %s5209_s1 = inlined_call_operand.vmem [shape: f32[8,128,32], index: 1, kind: input, shape index: {}]   ;;  %s5210_s0 = inlined_call_operand.vmem [shape: f32[8,8,32], index: 0, kind: input, shape index: {}]   ;;  %s5211_s8 = inlined_call_operand.vmem [shape: f32[8,8,128], index: 8, kind: output, shape index: {1}]   ;;  %s5212_s3 = inlined_call_operand.vmem [shape: f32[32,32], index: 3, kind: input, shape index: {}]   ;;  %s5213_s2 = inlined_call_operand.vmem [shape: f32[32,32], index: 2, kind: input, shape index: {}]   ;;  %s5214_s5 = inlined_call_operand.vmem [shape: f32[32,128], index: 5, kind: input, shape index: {}]   ;;  %s5215_s4 = inlined_call_operand.vmem [shape: f32[1,32], index: 4, kind: input, shape index: {}]   ;;  %s5216_s6 = inlined_call_operand.vmem [shape: f32[1,128], index: 6, kind: input, shape index: {}]   ;;  %s5217_s7 = inlined_call_operand.vmem [shape: f32[8,8,128], index: 7, kind: output, shape index: {0}]  }
   0x1   :  { %3383 = vmatprep.subr.bf16.mxu0 %v5231_v0  ;;  %3415 = vmatprep.subr.bf16.mxu1 %v5231_v0  ;;  %v36_v1 = vld [vmem:[%s5209_s1] sm:$0xff]  ;;  %v37_v2 = vld [vmem:[%s5209_s1 + $0x8] sm:$0xff]  ;;  %vm4010_vm1 = vmpackc.low %vm164_vm0, %vm164_vm0  ;;  %v5248_v3 = vmov 0.0  }
   0x2   :  { %v4014_v4 = vpack.c.bf16 %v37_v2, %v36_v1  ;;  %v52_v5 = vld [vmem:[%s5209_s1 + $0x80] sm:$0xff]  ;;  %v53_v6 = vld [vmem:[%s5209_s1 + $0x88] sm:$0xff]  ;;  %2795 = vmatprep.mubr.msk.f32.mxu0 %vm3953_vm2, %v5218_v7  ;;  %2830 = vmatprep.mubr.msk.f32.mxu1 %vm3953_vm2, %v5218_v7  ;;  %v38_v9 = vld [vmem:[%s5209_s1 + $0x10] sm:$0xff] }
   0x3   :  { %v4026_v8 = vpack.c.bf16 %v53_v6, %v52_v5  ;;  %v39_v10 = vld [vmem:[%s5209_s1 + $0x18] sm:$0xff]  ;;  %v54_v11 = vld [vmem:[%s5209_s1 + $0x90] sm:$0xff]  ;;  %v40_v15 = vld [vmem:[%s5209_s1 + $0x20] sm:$0xff] }
   0x4   :  { %3386 = vmatpush3.bf16.xpose.msk.msra.mxu0 %vm4010_vm1, %v4014_v4  ;;  %v55_v12 = vld [vmem:[%s5209_s1 + $0x98] sm:$0xff]  ;;  %v4048_v13 = vpack.c.bf16 %v39_v10, %v38_v9  ;;  %v41_v16 = vld [vmem:[%s5209_s1 + $0x28] sm:$0xff]  ;;  %v56_v17 = vld [vmem:[%s5209_s1 + $0xa0] sm:$0xff] }
   0x5   :  { %3418 = vmatpush3.bf16.xpose.msk.msra.mxu1 %vm4010_vm1, %v4026_v8  ;;  %3387 = vmatprep.subr.bf16.mxu0 %v5231_v0  ;;  %v4050_v14 = vpack.c.bf16 %v55_v12, %v54_v11  ;;  %v57_v18 = vld [vmem:[%s5209_s1 + $0xa8] sm:$0xff]  ;;  %v4072_v19 = vpack.c.bf16 %v41_v16, %v40_v15  ;;  %v42_v21 = vld [vmem:[%s5209_s1 + $0x30] sm:$0xff]  ;;  %v43_v22 = vld [vmem:[%s5209_s1 + $0x38] sm:$0xff] }
   0x6   :  { %3419 = vmatprep.subr.bf16.mxu1 %v5231_v0  ;;  %v4074_v20 = vpack.c.bf16 %v57_v18, %v56_v17  ;;  %v58_v23 = vld [vmem:[%s5209_s1 + $0xb0] sm:$0xff]  ;;  %v59_v24 = vld [vmem:[%s5209_s1 + $0xb8] sm:$0xff]  ;;  %v4096_v25 = vpack.c.bf16 %v43_v22, %v42_v21  ;;  %v44_v27 = vld [vmem:[%s5209_s1 + $0x40] sm:$0xff] }
   0x7   :  { %v4098_v26 = vpack.c.bf16 %v59_v24, %v58_v23  ;;  %v45_v28 = vld [vmem:[%s5209_s1 + $0x48] sm:$0xff]  ;;  %v60_v29 = vld [vmem:[%s5209_s1 + $0xc0] sm:$0xff]  ;;  %v46_v33 = vld [vmem:[%s5209_s1 + $0x50] sm:$0xff] }
   0x8   :  { %v61_v30 = vld [vmem:[%s5209_s1 + $0xc8] sm:$0xff]  ;;  %v4120_v31 = vpack.c.bf16 %v45_v28, %v44_v27  ;;  %v47_v34 = vld [vmem:[%s5209_s1 + $0x58] sm:$0xff]  ;;  %v62_v35 = vld [vmem:[%s5209_s1 + $0xd0] sm:$0xff] }
   0x9   :  { %v4122_v32 = vpack.c.bf16 %v61_v30, %v60_v29  ;;  %v63_v36 = vld [vmem:[%s5209_s1 + $0xd8] sm:$0xff]  ;;  %v4144_v37 = vpack.c.bf16 %v47_v34, %v46_v33  ;;  %v48_v39 = vld [vmem:[%s5209_s1 + $0x60] sm:$0xff]  ;;  %v49_v40 = vld [vmem:[%s5209_s1 + $0x68] sm:$0xff] }
   0xa   :  { %v4146_v38 = vpack.c.bf16 %v63_v36, %v62_v35  ;;  %v64_v41 = vld [vmem:[%s5209_s1 + $0xe0] sm:$0xff]  ;;  %v65_v42 = vld [vmem:[%s5209_s1 + $0xe8] sm:$0xff]  ;;  %v4168_v43 = vpack.c.bf16 %v49_v40, %v48_v39  ;;  %v50_v45 = vld [vmem:[%s5209_s1 + $0x70] sm:$0xff] }
   0xb   :  { %v4170_v44 = vpack.c.bf16 %v65_v42, %v64_v41  ;;  %v51_v46 = vld [vmem:[%s5209_s1 + $0x78] sm:$0xff]  ;;  %v66_v47 = vld [vmem:[%s5209_s1 + $0xf0] sm:$0xff]  ;;  %v68_v51 = vld [vmem:[%s5209_s1 + $0x100] sm:$0xff] }
   0xc   :  { %3390 = vmatpush3.bf16.xpose.msk.msra.mxu0 %vm4010_vm1, %v4048_v13  ;;  %v67_v48 = vld [vmem:[%s5209_s1 + $0xf8] sm:$0xff]  ;;  %v4192_v49 = vpack.c.bf16 %v51_v46, %v50_v45  ;;  %v69_v52 = vld [vmem:[%s5209_s1 + $0x108] sm:$0xff]  ;;  %v84_v53 = vld [vmem:[%s5209_s1 + $0x180] sm:$0xff] }
   0xd   :  { %3422 = vmatpush3.bf16.xpose.msk.msra.mxu1 %vm4010_vm1, %v4050_v14  ;;  %3391 = vmatprep.subr.bf16.mxu0 %v5231_v0  ;;  %v4194_v50 = vpack.c.bf16 %v67_v48, %v66_v47  ;;  %v85_v54 = vld [vmem:[%s5209_s1 + $0x188] sm:$0xff]  ;;  %v28_v55 = vld [vmem:[%s5210_s0] sm:$0xff]  ;;  %v4219_v56 = vpack.c.bf16 %v69_v52, %v68_v51  ;;  %v70_v59 = vld [vmem:[%s5209_s1 + $0x110] sm:$0xff] }
   0xe   :  { %3423 = vmatprep.subr.bf16.mxu1 %v5231_v0  ;;  %v29_v57 = vld [vmem:[%s5210_s0 + $0x8] sm:$0xff]  ;;  %v4224_v58 = vpack.c.bf16 %v85_v54, %v84_v53  ;;  %v71_v60 = vld [vmem:[%s5209_s1 + $0x118] sm:$0xff]  ;;  %v86_v61 = vld [vmem:[%s5209_s1 + $0x190] sm:$0xff] }
   0xf   :  { %v87_v62 = vld [vmem:[%s5209_s1 + $0x198] sm:$0xff]  ;;  %v4252_v63 = vpack.c.bf16 %v71_v60, %v70_v59  ;;  %v72_v2 = vld [vmem:[%s5209_s1 + $0x120] sm:$0xff]  ;;  %v73_v5 = vld [vmem:[%s5209_s1 + $0x128] sm:$0xff] }
  0x10   :  { %v4254_v1 = vpack.c.bf16 %v87_v62, %v86_v61  ;;  %v88_v6 = vld [vmem:[%s5209_s1 + $0x1a0] sm:$0xff]  ;;  %v89_v9 = vld [vmem:[%s5209_s1 + $0x1a8] sm:$0xff]  ;;  %v4276_v10 = vpack.c.bf16 %v73_v5, %v72_v2  ;;  %v74_v12 = vld [vmem:[%s5209_s1 + $0x130] sm:$0xff] }
  0x11   :  { %v4278_v11 = vpack.c.bf16 %v89_v9, %v88_v6  ;;  %v75_v15 = vld [vmem:[%s5209_s1 + $0x138] sm:$0xff]  ;;  %v90_v16 = vld [vmem:[%s5209_s1 + $0x1b0] sm:$0xff]  ;;  %v76_v22 = vld [vmem:[%s5209_s1 + $0x140] sm:$0xff] }
  0x12   :  { %v91_v17 = vld [vmem:[%s5209_s1 + $0x1b8] sm:$0xff]  ;;  %v4300_v18 = vpack.c.bf16 %v75_v15, %v74_v12  ;;  %v77_v23 = vld [vmem:[%s5209_s1 + $0x148] sm:$0xff]  ;;  %v92_v24 = vld [vmem:[%s5209_s1 + $0x1c0] sm:$0xff] }
  0x13   :  { %v4302_v21 = vpack.c.bf16 %v91_v17, %v90_v16  ;;  %v93_v27 = vld [vmem:[%s5209_s1 + $0x1c8] sm:$0xff]  ;;  %v4324_v28 = vpack.c.bf16 %v77_v23, %v76_v22  ;;  %v78_v30 = vld [vmem:[%s5209_s1 + $0x150] sm:$0xff]  ;;  %v79_v33 = vld [vmem:[%s5209_s1 + $0x158] sm:$0xff] }
  0x14   :  { %3394 = vmatpush3.bf16.xpose.msk.msra.mxu0 %vm4010_vm1, %v4072_v19  ;;  %v4326_v29 = vpack.c.bf16 %v93_v27, %v92_v24  ;;  %v94_v34 = vld [vmem:[%s5209_s1 + $0x1d0] sm:$0xff]  ;;  %v95_v35 = vld [vmem:[%s5209_s1 + $0x1d8] sm:$0xff]  ;;  %v4348_v36 = vpack.c.bf16 %v79_v33, %v78_v30  ;;  %v80_v40 = vld [vmem:[%s5209_s1 + $0x160] sm:$0xff] }
  0x15   :  { %3426 = vmatpush3.bf16.xpose.msk.msra.mxu1 %vm4010_vm1, %v4074_v20  ;;  %3395 = vmatprep.subr.bf16.mxu0 %v5231_v0  ;;  %v4350_v39 = vpack.c.bf16 %v95_v35, %v94_v34  ;;  %v81_v41 = vld [vmem:[%s5209_s1 + $0x168] sm:$0xff]  ;;  %v96_v42 = vld [vmem:[%s5209_s1 + $0x1e0] sm:$0xff]  ;;  %v82_v48 = vld [vmem:[%s5209_s1 + $0x170] sm:$0xff] }
  0x16   :  { %3427 = vmatprep.subr.bf16.mxu1 %v5231_v0  ;;  %v97_v45 = vld [vmem:[%s5209_s1 + $0x1e8] sm:$0xff]  ;;  %v4372_v46 = vpack.c.bf16 %v81_v41, %v80_v40  ;;  %v83_v51 = vld [vmem:[%s5209_s1 + $0x178] sm:$0xff]  ;;  %v98_v52 = vld [vmem:[%s5209_s1 + $0x1f0] sm:$0xff] }
  0x17   :  { %v4374_v47 = vpack.c.bf16 %v97_v45, %v96_v42  ;;  %v99_v53 = vld [vmem:[%s5209_s1 + $0x1f8] sm:$0xff]  ;;  %v4396_v54 = vpack.c.bf16 %v83_v51, %v82_v48  ;;  %v101_v59 = vld [vmem:[%s5209_s1 + $0x208] sm:$0xff]  ;;  %v116_v60 = vld [vmem:[%s5209_s1 + $0x280] sm:$0xff] }
  0x18   :  { %v117_v61 = vld [vmem:[%s5209_s1 + $0x288] sm:$0xff]  ;;  %v4423_v62 = vld [vmem:[%s5210_s0 + $0x10] sm:$0xff]  ;;  %v4430_v5 = vld [vmem:[%s5210_s0 + $0x18] sm:$0xff] }
  0x19   :  { %5236 = vst [vmem:[#allocation2_spill] sm:$0xff] %v4423_v62  ;;  %5237 = vst [vmem:[#allocation3_spill] sm:$0xff] %v4430_v5  ;;  %v4432_v6 = vpack.c.bf16 %v117_v61, %v116_v60  ;;  %v102_v9 = vld [vmem:[%s5209_s1 + $0x210] sm:$0xff]  ;;  %v103_v12 = vld [vmem:[%s5209_s1 + $0x218] sm:$0xff] }
  0x1a   :  { %v118_v15 = vld [vmem:[%s5209_s1 + $0x290] sm:$0xff]  ;;  %v119_v16 = vld [vmem:[%s5209_s1 + $0x298] sm:$0xff]  ;;  %v4462_v17 = vpack.c.bf16 %v103_v12, %v102_v9  ;;  %v104_v23 = vld [vmem:[%s5209_s1 + $0x220] sm:$0xff] }
  0x1b   :  { %v4464_v22 = vpack.c.bf16 %v119_v16, %v118_v15  ;;  %v105_v24 = vld [vmem:[%s5209_s1 + $0x228] sm:$0xff]  ;;  %v120_v27 = vld [vmem:[%s5209_s1 + $0x2a0] sm:$0xff]  ;;  %v106_v35 = vld [vmem:[%s5209_s1 + $0x230] sm:$0xff] }
  0x1c   :  { %3398 = vmatpush3.bf16.xpose.msk.msra.mxu0 %vm4010_vm1, %v4096_v25  ;;  %v121_v30 = vld [vmem:[%s5209_s1 + $0x2a8] sm:$0xff]  ;;  %v4486_v33 = vpack.c.bf16 %v105_v24, %v104_v23  ;;  %v107_v40 = vld [vmem:[%s5209_s1 + $0x238] sm:$0xff]  ;;  %v122_v41 = vld [vmem:[%s5209_s1 + $0x2b0] sm:$0xff] }
  0x1d   :  { %3430 = vmatpush3.bf16.xpose.msk.msra.mxu1 %vm4010_vm1, %v4098_v26  ;;  %3399 = vmatprep.subr.bf16.mxu0 %v5231_v0  ;;  %v4488_v34 = vpack.c.bf16 %v121_v30, %v120_v27  ;;  %v123_v42 = vld [vmem:[%s5209_s1 + $0x2b8] sm:$0xff]  ;;  %v4510_v45 = vpack.c.bf16 %v107_v40, %v106_v35  ;;  %v108_v51 = vld [vmem:[%s5209_s1 + $0x240] sm:$0xff]  ;;  %v110_v61 = vld [vmem:[%s5209_s1 + $0x250] sm:$0xff] }
  0x1e   :  { %3431 = vmatprep.subr.bf16.mxu1 %v5231_v0  ;;  %v4512_v48 = vpack.c.bf16 %v123_v42, %v122_v41  ;;  %v111_v9 = vld [vmem:[%s5209_s1 + $0x258] sm:$0xff]  ;;  %v126_v12 = vld [vmem:[%s5209_s1 + $0x2d0] sm:$0xff]  ;;  %v112_v24 = vld [vmem:[%s5209_s1 + $0x260] sm:$0xff] }
  0x1f   :  { %v127_v15 = vld [vmem:[%s5209_s1 + $0x2d8] sm:$0xff]  ;;  %v4558_v16 = vpack.c.bf16 %v111_v9, %v110_v61  ;;  %v113_v27 = vld [vmem:[%s5209_s1 + $0x268] sm:$0xff]  ;;  %v128_v30 = vld [vmem:[%s5209_s1 + $0x2e0] sm:$0xff] }
  0x20   :  { %v4560_v23 = vpack.c.bf16 %v127_v15, %v126_v12  ;;  %v129_v35 = vld [vmem:[%s5209_s1 + $0x2e8] sm:$0xff]  ;;  %v4582_v40 = vpack.c.bf16 %v113_v27, %v112_v24  ;;  %v114_v42 = vld [vmem:[%s5209_s1 + $0x270] sm:$0xff]  ;;  %v132_v9 = vld [vmem:[%s5209_s1 + $0x300] sm:$0xff] }
  0x21   :  { %v4584_v41 = vpack.c.bf16 %v129_v35, %v128_v30  ;;  %v133_v12 = vld [vmem:[%s5209_s1 + $0x308] sm:$0xff]  ;;  %v148_v15 = vld [vmem:[%s5209_s1 + $0x380] sm:$0xff] }
  0x22   :  { %v149_v24 = vld [vmem:[%s5209_s1 + $0x388] sm:$0xff]  ;;  %v4633_v27 = vld [vmem:[%s5210_s0 + $0x20] sm:$0xff]  ;;  %v4635_v30 = vpack.c.bf16 %v133_v12, %v132_v9  ;;  %v151_v9 = vld [vmem:[%s5209_s1 + $0x398] sm:$0xff] }
  0x23   :  { %5238 = vst [vmem:[#allocation4_spill] sm:$0xff] %v4633_v27  ;;  %v4640_v35 = vld [vmem:[%s5210_s0 + $0x28] sm:$0xff] }
  0x24   :  { %3402 = vmatpush3.bf16.xpose.msk.msra.mxu0 %vm4010_vm1, %v4120_v31  ;;  %5239 = vst [vmem:[#allocation5_spill] sm:$0xff] %v4640_v35 }
  0x25   :  { %3434 = vmatpush3.bf16.xpose.msk.msra.mxu1 %vm4010_vm1, %v4122_v32  ;;  %3403 = vmatprep.subr.bf16.mxu0 %v5231_v0 }
  0x26   :  { %3435 = vmatprep.subr.bf16.mxu1 %v5231_v0 }
  0x2c   :  { %3406 = vmatpush3.bf16.xpose.msk.msra.mxu0 %vm4010_vm1, %v4144_v37 }
  0x2d   :  { %3438 = vmatpush3.bf16.xpose.msk.msra.mxu1 %vm4010_vm1, %v4146_v38  ;;  %3407 = vmatprep.subr.bf16.mxu0 %v5231_v0 }
  0x2e   :  { %3439 = vmatprep.subr.bf16.mxu1 %v5231_v0 }
  0x34   :  { %3410 = vmatpush3.bf16.xpose.msk.msra.mxu0 %vm4010_vm1, %v4168_v43 }
  0x35   :  { %3442 = vmatpush3.bf16.xpose.msk.msra.mxu1 %vm4010_vm1, %v4170_v44  ;;  %3411 = vmatprep.subr.bf16.mxu0 %v5231_v0 }
  0x36   :  { %3443 = vmatprep.subr.bf16.mxu1 %v5231_v0 }
  0x3c   :  { %3414 = vmatpush3.bf16.xpose.msk.msra.mxu0 %vm4010_vm1, %v4192_v49 }
  0x3d   :  { %3446 = vmatpush3.bf16.xpose.msk.msra.mxu1 %vm4010_vm1, %v4194_v50  ;;  %3447 = vmatprep.subr.bf16.mxu0 %v5231_v0 }
  0x3e   :  { %3479 = vmatprep.subr.bf16.mxu1 %v5231_v0 }
  0x43   :  { %2796 = vmatmul.mubr.msk.f32.vlgmr.msra.gmra.mrb[0].mxu0 %vm164_vm0, %v28_v55  ;;  %v4398_v55 = vpack.c.bf16 %v99_v53, %v98_v52  ;;  %v109_v52 = vld [vmem:[%s5209_s1 + $0x248] sm:$0xff]  ;;  %v124_v53 = vld [vmem:[%s5209_s1 + $0x2c0] sm:$0xff] }
  0x44   :  { %2831 = vmatmul.mubr.msk.f32.vlgmr.msra.gmra.mrb[0].mxu1 %vm164_vm0, %v29_v57  ;;  %3450 = vmatpush3.bf16.xpose.msk.msra.mxu0 %vm4010_vm1, %v4219_v56  ;;  %v100_v57 = vld [vmem:[%s5209_s1 + $0x200] sm:$0xff] }
  0x45   :  { %3482 = vmatpush3.bf16.xpose.msk.msra.mxu1 %vm4010_vm1, %v4224_v58  ;;  %3451 = vmatprep.subr.bf16.mxu0 %v5231_v0  ;;  %v4425_v2 = vpack.c.bf16 %v101_v59, %v100_v57  ;;  %v125_v57 = vld [vmem:[%s5209_s1 + $0x2c8] sm:$0xff]  ;;  %v4534_v59 = vpack.c.bf16 %v109_v52, %v108_v51  ;;  %v115_v51 = vld [vmem:[%s5209_s1 + $0x278] sm:$0xff]  ;;  %v130_v52 = vld [vmem:[%s5209_s1 + $0x2f0] sm:$0xff] }
  0x46   :  { %3483 = vmatprep.subr.bf16.mxu1 %v5231_v0  ;;  %2865 = vmatprep.mubr.msk.f32.mxu0 %vm3953_vm2, %v5218_v7  ;;  %v4536_v60 = vpack.c.bf16 %v125_v57, %v124_v53  ;;  %v131_v53 = vld [vmem:[%s5209_s1 + $0x2f8] sm:$0xff]  ;;  %v4606_v57 = vpack.c.bf16 %v115_v51, %v114_v42  ;;  %v4642_v42 = vpack.c.bf16 %v149_v24, %v148_v15  ;;  %v134_v51 = vld [vmem:[%s5209_s1 + $0x310] sm:$0xff]  ;;  %v136_v24 = vld [vmem:[%s5209_s1 + $0x320] sm:$0xff] }
  0x47   :  { %2900 = vmatprep.mubr.msk.f32.mxu1 %vm3953_vm2, %v5218_v7  ;;  %v4608_v61 = vpack.c.bf16 %v131_v53, %v130_v52  ;;  %v135_v52 = vld [vmem:[%s5209_s1 + $0x318] sm:$0xff]  ;;  %v150_v53 = vld [vmem:[%s5209_s1 + $0x390] sm:$0xff] }
  0x48   :  { %v4672_v12 = vpack.c.bf16 %v135_v52, %v134_v51  ;;  %v4674_v15 = vpack.c.bf16 %v151_v9, %v150_v53  ;;  %v137_v51 = vld [vmem:[%s5209_s1 + $0x328] sm:$0xff]  ;;  %v152_v52 = vld [vmem:[%s5209_s1 + $0x3a0] sm:$0xff] }
  0x49   :  { %v153_v53 = vld [vmem:[%s5209_s1 + $0x3a8] sm:$0xff]  ;;  %v4696_v9 = vpack.c.bf16 %v137_v51, %v136_v24  ;;  %v139_v24 = vld [vmem:[%s5209_s1 + $0x338] sm:$0xff]  ;;  %v154_v51 = vld [vmem:[%s5209_s1 + $0x3b0] sm:$0xff] }
  0x4c   :  { %3454 = vmatpush3.bf16.xpose.msk.msra.mxu0 %vm4010_vm1, %v4252_v63 }
  0x4d   :  { %3486 = vmatpush3.bf16.xpose.msk.msra.mxu1 %vm4010_vm1, %v4254_v1  ;;  %3455 = vmatprep.subr.bf16.mxu0 %v5231_v0 }
  0x4e   :  { %3487 = vmatprep.subr.bf16.mxu1 %v5231_v0 }
  0x54   :  { %3458 = vmatpush3.bf16.xpose.msk.msra.mxu0 %vm4010_vm1, %v4276_v10 }
  0x55   :  { %3490 = vmatpush3.bf16.xpose.msk.msra.mxu1 %vm4010_vm1, %v4278_v11  ;;  %3459 = vmatprep.subr.bf16.mxu0 %v5231_v0 }
  0x56   :  { %3491 = vmatprep.subr.bf16.mxu1 %v5231_v0 }
  0x5c   :  { %3462 = vmatpush3.bf16.xpose.msk.msra.mxu0 %vm4010_vm1, %v4300_v18 }
  0x5d   :  { %3494 = vmatpush3.bf16.xpose.msk.msra.mxu1 %vm4010_vm1, %v4302_v21  ;;  %3463 = vmatprep.subr.bf16.mxu0 %v5231_v0 }
  0x5e   :  { %3495 = vmatprep.subr.bf16.mxu1 %v5231_v0 }
  0x64   :  { %3466 = vmatpush3.bf16.xpose.msk.msra.mxu0 %vm4010_vm1, %v4324_v28 }
  0x65   :  { %3498 = vmatpush3.bf16.xpose.msk.msra.mxu1 %vm4010_vm1, %v4326_v29  ;;  %3467 = vmatprep.subr.bf16.mxu0 %v5231_v0 }
  0x66   :  { %3499 = vmatprep.subr.bf16.mxu1 %v5231_v0 }
  0x6c   :  { %3470 = vmatpush3.bf16.xpose.msk.msra.mxu0 %vm4010_vm1, %v4348_v36 }
  0x6d   :  { %3502 = vmatpush3.bf16.xpose.msk.msra.mxu1 %vm4010_vm1, %v4350_v39  ;;  %3471 = vmatprep.subr.bf16.mxu0 %v5231_v0 }
  0x6e   :  { %3503 = vmatprep.subr.bf16.mxu1 %v5231_v0 }
  0x74   :  { %3474 = vmatpush3.bf16.xpose.msk.msra.mxu0 %vm4010_vm1, %v4372_v46 }
  0x75   :  { %3506 = vmatpush3.bf16.xpose.msk.msra.mxu1 %vm4010_vm1, %v4374_v47  ;;  %3475 = vmatprep.subr.bf16.mxu0 %v5231_v0 }
  0x76   :  { %3507 = vmatprep.subr.bf16.mxu1 %v5231_v0 }
  0x7c   :  { %3478 = vmatpush3.bf16.xpose.msk.msra.mxu0 %vm4010_vm1, %v4396_v54 }
  0x7d   :  { %3510 = vmatpush3.bf16.xpose.msk.msra.mxu1 %vm4010_vm1, %v4398_v55  ;;  %3511 = vmatprep.subr.bf16.mxu0 %v5231_v0 }
  0x7e   :  { %3543 = vmatprep.subr.bf16.mxu1 %v5231_v0 }
  0x83   :  { %2866 = vmatmul.mubr.msk.f32.vlgmr.msra.gmra.mrb[2].mxu0 %vm164_vm0, %v4423_v62  ;;  %v140_v62 = vld [vmem:[%s5209_s1 + $0x340] sm:$0xff] }
  0x84   :  { %2901 = vmatmul.mubr.msk.f32.vlgmr.msra.gmra.mrb[2].mxu1 %vm164_vm0, %v4430_v5  ;;  %3514 = vmatpush3.bf16.xpose.msk.msra.mxu0 %vm4010_vm1, %v4425_v2  ;;  %v138_v5 = vld [vmem:[%s5209_s1 + $0x330] sm:$0xff] }
  0x85   :  { %3546 = vmatpush3.bf16.xpose.msk.msra.mxu1 %vm4010_vm1, %v4432_v6  ;;  %3515 = vmatprep.subr.bf16.mxu0 %v5231_v0 }
  0x86   :  { %3547 = vmatprep.subr.bf16.mxu1 %v5231_v0  ;;  %2935 = vmatprep.mubr.msk.f32.mxu0 %vm3953_vm2, %v5218_v7 }
  0x87   :  { %2970 = vmatprep.mubr.msk.f32.mxu1 %vm3953_vm2, %v5218_v7 }
  0x8c   :  { %3518 = vmatpush3.bf16.xpose.msk.msra.mxu0 %vm4010_vm1, %v4462_v17 }
  0x8d   :  { %3550 = vmatpush3.bf16.xpose.msk.msra.mxu1 %vm4010_vm1, %v4464_v22  ;;  %3519 = vmatprep.subr.bf16.mxu0 %v5231_v0 }
  0x8e   :  { %3551 = vmatprep.subr.bf16.mxu1 %v5231_v0 }
  0x94   :  { %3522 = vmatpush3.bf16.xpose.msk.msra.mxu0 %vm4010_vm1, %v4486_v33 }
  0x95   :  { %3554 = vmatpush3.bf16.xpose.msk.msra.mxu1 %vm4010_vm1, %v4488_v34  ;;  %3523 = vmatprep.subr.bf16.mxu0 %v5231_v0 }
  0x96   :  { %3555 = vmatprep.subr.bf16.mxu1 %v5231_v0 }
  0x9c   :  { %3526 = vmatpush3.bf16.xpose.msk.msra.mxu0 %vm4010_vm1, %v4510_v45 }
  0x9d   :  { %3558 = vmatpush3.bf16.xpose.msk.msra.mxu1 %vm4010_vm1, %v4512_v48  ;;  %3527 = vmatprep.subr.bf16.mxu0 %v5231_v0 }
  0x9e   :  { %3559 = vmatprep.subr.bf16.mxu1 %v5231_v0 }
  0xa4   :  { %3530 = vmatpush3.bf16.xpose.msk.msra.mxu0 %vm4010_vm1, %v4534_v59 }
  0xa5   :  { %3562 = vmatpush3.bf16.xpose.msk.msra.mxu1 %vm4010_vm1, %v4536_v60  ;;  %3531 = vmatprep.subr.bf16.mxu0 %v5231_v0 }
  0xa6   :  { %3563 = vmatprep.subr.bf16.mxu1 %v5231_v0 }
  0xac   :  { %3534 = vmatpush3.bf16.xpose.msk.msra.mxu0 %vm4010_vm1, %v4558_v16 }
  0xad   :  { %3566 = vmatpush3.bf16.xpose.msk.msra.mxu1 %vm4010_vm1, %v4560_v23  ;;  %3535 = vmatprep.subr.bf16.mxu0 %v5231_v0 }
  0xae   :  { %3567 = vmatprep.subr.bf16.mxu1 %v5231_v0 }
  0xb4   :  { %3538 = vmatpush3.bf16.xpose.msk.msra.mxu0 %vm4010_vm1, %v4582_v40 }
  0xb5   :  { %3570 = vmatpush3.bf16.xpose.msk.msra.mxu1 %vm4010_vm1, %v4584_v41  ;;  %3539 = vmatprep.subr.bf16.mxu0 %v5231_v0 }
  0xb6   :  { %3571 = vmatprep.subr.bf16.mxu1 %v5231_v0 }
  0xbc   :  { %3542 = vmatpush3.bf16.xpose.msk.msra.mxu0 %vm4010_vm1, %v4606_v57 }
  0xbd   :  { %3574 = vmatpush3.bf16.xpose.msk.msra.mxu1 %vm4010_vm1, %v4608_v61  ;;  %3575 = vmatprep.subr.bf16.mxu0 %v5231_v0 }
  0xbe   :  { %3607 = vmatprep.subr.bf16.mxu1 %v5231_v0 }
  0xc3   :  { %2936 = vmatmul.mubr.msk.f32.vlgmr.msra.gmra.mrb[4].mxu0 %vm164_vm0, %v4633_v27 }
  0xc4   :  { %2971 = vmatmul.mubr.msk.f32.vlgmr.msra.gmra.mrb[4].mxu1 %vm164_vm0, %v4640_v35  ;;  %3578 = vmatpush3.bf16.xpose.msk.msra.mxu0 %vm4010_vm1, %v4635_v30 }
  0xc5   :  { %3610 = vmatpush3.bf16.xpose.msk.msra.mxu1 %vm4010_vm1, %v4642_v42  ;;  %3579 = vmatprep.subr.bf16.mxu0 %v5231_v0 }
  0xc6   :  { %3611 = vmatprep.subr.bf16.mxu1 %v5231_v0  ;;  %3005 = vmatprep.mubr.msk.f32.mxu0 %vm3953_vm2, %v5218_v7 }
  0xc7   :  { %3040 = vmatprep.mubr.msk.f32.mxu1 %vm3953_vm2, %v5218_v7  ;;  %v4698_v7 = vpack.c.bf16 %v153_v53, %v152_v52  ;;  %v155_v52 = vld [vmem:[%s5209_s1 + $0x3b8] sm:$0xff]  ;;  %v4720_v53 = vpack.c.bf16 %v139_v24, %v138_v5  ;;  %v141_v5 = vld [vmem:[%s5209_s1 + $0x348] sm:$0xff]  ;;  %v156_v24 = vld [vmem:[%s5209_s1 + $0x3c0] sm:$0xff] }
  0xc8   :  { %v4722_v35 = vpack.c.bf16 %v155_v52, %v154_v51  ;;  %v157_v51 = vld [vmem:[%s5209_s1 + $0x3c8] sm:$0xff]  ;;  %v4744_v52 = vpack.c.bf16 %v141_v5, %v140_v62  ;;  %v143_v62 = vld [vmem:[%s5209_s1 + $0x358] sm:$0xff]  ;;  %v158_v5 = vld [vmem:[%s5209_s1 + $0x3d0] sm:$0xff] }
  0xc9   :  { %v4746_v27 = vpack.c.bf16 %v157_v51, %v156_v24  ;;  %v159_v24 = vld [vmem:[%s5209_s1 + $0x3d8] sm:$0xff] }
  0xca   :  { %5240 = vst [vmem:[#allocation6_spill] sm:$0xff] %v4722_v35  ;;  %5241 = vst [vmem:[#allocation7_spill] sm:$0xff] %v4744_v52 }
  0xcb   :  { %5242 = vst [vmem:[#allocation8_spill] sm:$0xff] %v4746_v27 }
  0xcc   :  { %3582 = vmatpush3.bf16.xpose.msk.msra.mxu0 %vm4010_vm1, %v4672_v12 }
  0xcd   :  { %3614 = vmatpush3.bf16.xpose.msk.msra.mxu1 %vm4010_vm1, %v4674_v15  ;;  %3583 = vmatprep.subr.bf16.mxu0 %v5231_v0 }
  0xce   :  { %3615 = vmatprep.subr.bf16.mxu1 %v5231_v0 }
  0xd4   :  { %3586 = vmatpush3.bf16.xpose.msk.msra.mxu0 %vm4010_vm1, %v4696_v9 }
  0xd5   :  { %3618 = vmatpush3.bf16.xpose.msk.msra.mxu1 %vm4010_vm1, %v4698_v7  ;;  %3587 = vmatprep.subr.bf16.mxu0 %v5231_v0 }
  0xd6   :  { %3619 = vmatprep.subr.bf16.mxu1 %v5231_v0 }
  0xdc   :  { %3590 = vmatpush3.bf16.xpose.msk.msra.mxu0 %vm4010_vm1, %v4720_v53 }
  0xdd   :  { %3622 = vmatpush3.bf16.xpose.msk.msra.mxu1 %vm4010_vm1, %v4722_v35  ;;  %3591 = vmatprep.subr.bf16.mxu0 %v5231_v0  ;;  %v142_v35 = vld [vmem:[%s5209_s1 + $0x350] sm:$0xff] }
  0xde   :  { %3623 = vmatprep.subr.bf16.mxu1 %v5231_v0  ;;  %v4768_v51 = vpack.c.bf16 %v143_v62, %v142_v35  ;;  %v145_v35 = vld [vmem:[%s5209_s1 + $0x368] sm:$0xff]  ;;  %v160_v62 = vld [vmem:[%s5209_s1 + $0x3e0] sm:$0xff] }
  0xe0   :  { %5243 = vst [vmem:[#allocation9_spill] sm:$0xff] %v4768_v51 }
  0xe4   :  { %3594 = vmatpush3.bf16.xpose.msk.msra.mxu0 %vm4010_vm1, %v4744_v52  ;;  %v144_v52 = vld [vmem:[%s5209_s1 + $0x360] sm:$0xff] }
  0xe5   :  { %3626 = vmatpush3.bf16.xpose.msk.msra.mxu1 %vm4010_vm1, %v4746_v27  ;;  %3595 = vmatprep.subr.bf16.mxu0 %v5231_v0  ;;  %v4770_v27 = vpack.c.bf16 %v159_v24, %v158_v5  ;;  %v161_v5 = vld [vmem:[%s5209_s1 + $0x3e8] sm:$0xff]  ;;  %v4792_v24 = vpack.c.bf16 %v145_v35, %v144_v52  ;;  %v147_v52 = vld [vmem:[%s5209_s1 + $0x378] sm:$0xff]  ;;  %v162_v35 = vld [vmem:[%s5209_s1 + $0x3f0] sm:$0xff] }
  0xe6   :  { %3627 = vmatprep.subr.bf16.mxu1 %v5231_v0 }
  0xe7   :  { %5244 = vst [vmem:[#allocation10_spill] sm:$0xff] %v4770_v27  ;;  %5245 = vst [vmem:[#allocation11_spill] sm:$0xff] %v4792_v24 }
  0xec   :  { %3598 = vmatpush3.bf16.xpose.msk.msra.mxu0 %vm4010_vm1, %v4768_v51  ;;  %v146_v51 = vld [vmem:[%s5209_s1 + $0x370] sm:$0xff] }
  0xed   :  { %3630 = vmatpush3.bf16.xpose.msk.msra.mxu1 %vm4010_vm1, %v4770_v27  ;;  %3599 = vmatprep.subr.bf16.mxu0 %v5231_v0  ;;  %v4794_v27 = vpack.c.bf16 %v161_v5, %v160_v62  ;;  %v163_v62 = vld [vmem:[%s5209_s1 + $0x3f8] sm:$0xff]  ;;  %v4816_v5 = vpack.c.bf16 %v147_v52, %v146_v51 }
  0xee   :  { %3631 = vmatprep.subr.bf16.mxu1 %v5231_v0  ;;  %v4836_v51 = vld [vmem:[%s5210_s0 + $0x38] sm:$0xff] }
  0xef   :  { %5246 = vst [vmem:[#allocation12_spill] sm:$0xff] %v4794_v27  ;;  %5247 = vst [vmem:[#allocation13_spill] sm:$0xff] %v4836_v51 }
  0xf4   :  { %3602 = vmatpush3.bf16.xpose.msk.msra.mxu0 %vm4010_vm1, %v4792_v24  ;;  %v4831_v24 = vld [vmem:[%s5210_s0 + $0x30] sm:$0xff] }
  0xf5   :  { %3634 = vmatpush3.bf16.xpose.msk.msra.mxu1 %vm4010_vm1, %v4794_v27  ;;  %3603 = vmatprep.subr.bf16.mxu0 %v5231_v0  ;;  %v4818_v27 = vpack.c.bf16 %v163_v62, %v162_v35 }
  0xf6   :  { %3635 = vmatprep.subr.bf16.mxu1 %v5231_v0 }
  0xfc   :  { %3606 = vmatpush3.bf16.xpose.msk.msra.mxu0 %vm4010_vm1, %v4816_v5 }
  0xfd   :  { %3638 = vmatpush3.bf16.xpose.msk.msra.mxu1 %vm4010_vm1, %v4818_v27  ;;  %3639 = vmatprep.subr.bf16.mxu0 %v5231_v0 }
  0xfe   :  { %3663 = vmatprep.subr.bf16.mxu1 %v5231_v0 }
 0x103   :  { %3006 = vmatmul.mubr.msk.f32.vlgmr.msra.gmra.mrb[6].mxu0 %vm164_vm0, %v4831_v24 }
 0x104   :  { %3041 = vmatmul.mubr.msk.f32.vlgmr.msra.gmra.mrb[6].mxu1 %vm164_vm0, %v4836_v51  ;;  %3641 = vmatpush3.bf16.msra.mxu0 %v4014_v4  ;;  %v1133_v4 = vlaneseq }
 0x105   :  { %3642 = vmatprep.subr.bf16.mxu0 %v5231_v0  ;;  %3665 = vmatpush3.bf16.msra.mxu1 %v4026_v8 }
 0x106   :  { %3666 = vmatprep.subr.bf16.mxu1 %v5231_v0  ;;  %3075 = vmatprep.mubr.msk.f32.mxu0 %vm3953_vm2, %v5248_v3  ;;  %v4858_v8 = vand.u32 127, %v1133_v4 }
 0x107   :  { %3110 = vmatprep.mubr.msk.f32.mxu1 %vm3953_vm2, %v5248_v3 }
 0x108   :  { %3644 = vmatpush3.bf16.msra.mxu0 %v4048_v13  ;;  %vm1135_vm3 = vcmp.lt.s32.totalorder %v4858_v8, 10 }
 0x109   :  { %3645 = vmatprep.subr.bf16.mxu0 %v5231_v0  ;;  %3668 = vmatpush3.bf16.msra.mxu1 %v4050_v14 }
 0x10a   :  { %3669 = vmatprep.subr.bf16.mxu1 %v5231_v0 }
 0x10c   :  { %3647 = vmatpush3.bf16.msra.mxu0 %v4072_v19 }
 0x10d   :  { %3648 = vmatprep.subr.bf16.mxu0 %v5231_v0  ;;  %3671 = vmatpush3.bf16.msra.mxu1 %v4074_v20 }
 0x10e   :  { %3672 = vmatprep.subr.bf16.mxu1 %v5231_v0 }
 0x110   :  { %3650 = vmatpush3.bf16.msra.mxu0 %v4096_v25 }
 0x111   :  { %3651 = vmatprep.subr.bf16.mxu0 %v5231_v0  ;;  %3674 = vmatpush3.bf16.msra.mxu1 %v4098_v26 }
 0x112   :  { %3675 = vmatprep.subr.bf16.mxu1 %v5231_v0 }
 0x114   :  { %3653 = vmatpush3.bf16.msra.mxu0 %v4120_v31 }
 0x115   :  { %3654 = vmatprep.subr.bf16.mxu0 %v5231_v0  ;;  %3677 = vmatpush3.bf16.msra.mxu1 %v4122_v32 }
 0x116   :  { %v282_v13 = vpop.f32.mrb[0].mxu0  ;;  %3678 = vmatprep.subr.bf16.mxu1 %v5231_v0 }
 0x117   :  { %v2797_v14 = vpop.f32.mrb[1].mxu0  ;;  %v403_v19 = vpop.f32.mrb[0].mxu1  ;;  %v1136_v20 = vsel %vm1135_vm3, %v282_v13, -1e+30 }
 0x118   :  { %v2832_v25 = vpop.f32.mrb[1].mxu1  ;;  %1144 = vmax.xlane.f32.xlu0 %v1136_v20  ;;  %3656 = vmatpush3.bf16.msra.mxu0 %v4144_v37  ;;  %v1137_v26 = vsel %vm1135_vm3, %v403_v19, -1e+30 }
 0x119   :  { %3657 = vmatprep.subr.bf16.mxu0 %v5231_v0  ;;  %3680 = vmatpush3.bf16.msra.mxu1 %v4146_v38 }
 0x11a   :  { %3681 = vmatprep.subr.bf16.mxu1 %v5231_v0 }
 0x11c   :  { %1146 = vmax.xlane.f32.xlu0 %v1137_v26  ;;  %3659 = vmatpush3.bf16.msra.mxu0 %v4168_v43 }
 0x11d   :  { %3660 = vmatprep.subr.bf16.mxu0 %v5231_v0  ;;  %3683 = vmatpush3.bf16.msra.mxu1 %v4170_v44 }
 0x11e   :  { %3684 = vmatprep.subr.bf16.mxu1 %v5231_v0 }
 0x120   :  { %3662 = vmatpush3.bf16.msra.mxu0 %v4192_v49 }
 0x121   :  { %3686 = vmatpush3.bf16.msra.mxu1 %v4194_v50  ;;  %3687 = vmatprep.subr.bf16.mxu0 %v5231_v0 }
 0x122   :  { %3711 = vmatprep.subr.bf16.mxu1 %v5231_v0 }
 0x156   :  { %v524_v31 = vpop.f32.mrb[2].mxu0 }
 0x157   :  { %v2867_v32 = vpop.f32.mrb[3].mxu0  ;;  %v645_v37 = vpop.f32.mrb[2].mxu1  ;;  %v1138_v38 = vsel %vm1135_vm3, %v524_v31, -1e+30 }
 0x158   :  { %v2902_v43 = vpop.f32.mrb[3].mxu1  ;;  %1148 = vmax.xlane.f32.xlu1 %v1138_v38  ;;  %v1139_v44 = vsel %vm1135_vm3, %v645_v37, -1e+30 }
 0x15c   :  { %1150 = vmax.xlane.f32.xlu1 %v1139_v44 }
 0x196   :  { %v766_v52 = vpop.f32.mrb[4].mxu0 }
 0x197   :  { %v887_v49 = vpop.f32.mrb[4].mxu1  ;;  %v2937_v35 = vpop.f32.mrb[5].mxu0  ;;  %v1140_v50 = vsel %vm1135_vm3, %v766_v52, -1e+30 }
 0x198   :  { %v2972_v62 = vpop.f32.mrb[5].mxu1  ;;  %v1141_v4 = vsel %vm1135_vm3, %v887_v49, -1e+30  ;;  %1152 = vmax.xlane.f32.xlu0 %v1140_v50 }
 0x199   :  { %1154 = vmax.xlane.f32.xlu1 %v1141_v4 }
 0x1a5   :  { %v1145_v13 = vpop.xlane.xlu0 %1144 }
 0x1a6   :  { %v1160_v14 = vsub.f32 %v1136_v20, %v1145_v13 }
 0x1a8   :  { %v1168_v19 = vmul.f32 1.442695, %v1160_v14 }
 0x1a9   :  { %v1147_v25 = vpop.xlane.xlu0 %1146 }
 0x1aa   :  { %3870 = vpow2.f32 %v1168_v19  ;;  %v1161_v31 = vsub.f32 %v1137_v26, %v1147_v25 }
 0x1ac   :  { %v1170_v32 = vmul.f32 1.442695, %v1161_v31 }
 0x1ae   :  { %3872 = vpow2.f32 %v1170_v32 }
 0x1b4   :  { %v3871_v37 = vpop.eup %3870 }
 0x1b5   :  { %1184 = vadd.xlane.f32.xlu0 %v3871_v37 }
 0x1b8   :  { %v3873_v43 = vpop.eup %3872 }
 0x1b9   :  { %1186 = vadd.xlane.f32.xlu1 %v3873_v43 }
 0x1d6   :  { %v1008_v35 = vpop.f32.mrb[6].mxu0 }
 0x1d7   :  { %v1129_v52 = vpop.f32.mrb[6].mxu1  ;;  %v3007_v62 = vpop.f32.mrb[7].mxu0  ;;  %v4895_v49 = vsel %vm1135_vm3, %v1008_v35, -1e+30 }
 0x1d8   :  { %v3042_v0 = vpop.f32.mrb[7].mxu1  ;;  %v4899_v20 = vsel %vm1135_vm3, %v1129_v52, -1e+30  ;;  %1156 = vmax.xlane.f32.xlu0 %v4895_v49 }
 0x1d9   :  { %1158 = vmax.xlane.f32.xlu1 %v4899_v20 }
 0x1e5   :  { %v1149_v26 = vpop.xlane.xlu1 %1148 }
 0x1e6   :  { %v1162_v13 = vsub.f32 %v1138_v38, %v1149_v26 }
 0x1e8   :  { %v1172_v14 = vmul.f32 1.442695, %v1162_v13 }
 0x1e9   :  { %v1151_v19 = vpop.xlane.xlu1 %1150 }
 0x1ea   :  { %3874 = vpow2.f32 %v1172_v14  ;;  %v1163_v25 = vsub.f32 %v1139_v44, %v1151_v19 }
 0x1ec   :  { %v1174_v31 = vmul.f32 1.442695, %v1163_v25 }
 0x1ee   :  { %3876 = vpow2.f32 %v1174_v31 }
 0x1f4   :  { %v4903_v32 = vpop.eup %3874 }
 0x1f5   :  { %1188 = vadd.xlane.f32.xlu0 %v4903_v32 }
 0x1f8   :  { %v4906_v0 = vpop.eup %3876 }
 0x1f9   :  { %1190 = vadd.xlane.f32.xlu1 %v4906_v0 }
 0x225   :  { %v1153_v8 = vpop.xlane.xlu0 %1152 }
 0x226   :  { %v1155_v35 = vpop.xlane.xlu1 %1154  ;;  %v1164_v52 = vsub.f32 %v1140_v50, %v1153_v8  ;;  %v5259_v8 = vld [vmem:[#allocation5_spill] sm:$0xff] }
 0x227   :  { %v1165_v62 = vsub.f32 %v1141_v4, %v1155_v35  ;;  %v5249_v4 = vmov 0.0|0.0   ;;  %v5260_v35 = vld [vmem:[#allocation3_spill] sm:$0xff] }
 0x228   :  { %v1176_v51 = vmul.f32 1.442695, %v1164_v52  ;;  %v5261_v52 = vld [vmem:[#allocation13_spill] sm:$0xff] }
 0x229   :  { %v1178_v38 = vmul.f32 1.442695, %v1165_v62 }
 0x22a   :  { %3878 = vpow2.f32 %v1176_v51 }
 0x22b   :  { %3880 = vpow2.f32 %v1178_v38 }
 0x234   :  { %v4909_v26 = vpop.eup %3878 }
 0x235   :  { %v4911_v44 = vpop.eup %3880  ;;  %1192 = vadd.xlane.f32.xlu0 %v4909_v26 }
 0x236   :  { %1194 = vadd.xlane.f32.xlu1 %v4911_v44 }
 0x242   :  { %v1185_v13 = vpop.xlane.xlu0 %1184 }
 0x243   :  { %3882 = vrcp.f32 %v1185_v13 }
 0x246   :  { %v1187_v14 = vpop.xlane.xlu1 %1186 }
 0x247   :  { %3884 = vrcp.f32 %v1187_v14 }
 0x24d   :  { %v3883_v19 = vpop.eup %3882 }
 0x24e   :  { %v1201_v25 = vmul.f32 %v3883_v19, %v3871_v37 }
 0x250   :  { %3076 = vmatmul.mubr.f32.vlgmr.msra.gmra.mrb[8].mxu0 %v1201_v25  ;;  %2277 = vst [vmem:[%s5211_s8] sm:$0xff] %v1201_v25  ;;  %v2041_v25 = vld [vmem:[%s5214_s5] sm:$0xff] }
 0x251   :  { %v3885_v51 = vpop.eup %3884  ;;  %3689 = vmatpush3.bf16.msra.mxu0 %v4219_v56  ;;  %3145 = vmatprep.mubr.msk.f32.mxu0 %vm3953_vm2, %v5248_v3 }
 0x252   :  { %v1203_v50 = vmul.f32 %v3885_v51, %v3873_v43  ;;  %3690 = vmatprep.subr.bf16.mxu0 %v5249_v4  ;;  %v1778_v43 = vld [vmem:[%s5213_s2 + $0x10] sm:$0xff]  ;;  %v2042_v51 = vld [vmem:[%s5214_s5 + $0x8] sm:$0xff] }
 0x254   :  { %3111 = vmatmul.mubr.f32.vlgmr.msra.gmra.mrb[8].mxu1 %v1203_v50  ;;  %2278 = vst [vmem:[%s5211_s8 + $0x8] sm:$0xff] %v1203_v50  ;;  %v2043_v50 = vld [vmem:[%s5214_s5 + $0x10] sm:$0xff] }
 0x255   :  { %3713 = vmatpush3.bf16.msra.mxu1 %v4224_v58  ;;  %3692 = vmatpush3.bf16.msra.mxu0 %v4252_v63 }
 0x256   :  { %3693 = vmatprep.subr.bf16.mxu0 %v5249_v4  ;;  %3714 = vmatprep.subr.bf16.mxu1 %v5249_v4 }
 0x257   :  { %3180 = vmatprep.mubr.msk.f32.mxu1 %vm3953_vm2, %v5248_v3 }
 0x259   :  { %3695 = vmatpush3.bf16.msra.mxu0 %v4276_v10  ;;  %3716 = vmatpush3.bf16.msra.mxu1 %v4254_v1 }
 0x25a   :  { %3696 = vmatprep.subr.bf16.mxu0 %v5249_v4  ;;  %3717 = vmatprep.subr.bf16.mxu1 %v5249_v4 }
 0x25d   :  { %3698 = vmatpush3.bf16.msra.mxu0 %v4300_v18  ;;  %3719 = vmatpush3.bf16.msra.mxu1 %v4278_v11 }
 0x25e   :  { %3699 = vmatprep.subr.bf16.mxu0 %v5249_v4  ;;  %3720 = vmatprep.subr.bf16.mxu1 %v5249_v4 }
 0x261   :  { %3701 = vmatpush3.bf16.msra.mxu0 %v4324_v28  ;;  %3722 = vmatpush3.bf16.msra.mxu1 %v4302_v21 }
 0x262   :  { %3702 = vmatprep.subr.bf16.mxu0 %v5249_v4  ;;  %3723 = vmatprep.subr.bf16.mxu1 %v5249_v4 }
 0x265   :  { %v1157_v56 = vpop.xlane.xlu0 %1156  ;;  %3704 = vmatpush3.bf16.msra.mxu0 %v4348_v36  ;;  %3725 = vmatpush3.bf16.msra.mxu1 %v4326_v29 }
 0x266   :  { %v1159_v58 = vpop.xlane.xlu1 %1158  ;;  %v1166_v63 = vsub.f32 %v4895_v49, %v1157_v56  ;;  %3705 = vmatprep.subr.bf16.mxu0 %v5249_v4  ;;  %3726 = vmatprep.subr.bf16.mxu1 %v5249_v4  ;;  %v1779_v49 = vld [vmem:[%s5213_s2 + $0x18] sm:$0xff] }
 0x267   :  { %v1167_v1 = vsub.f32 %v4899_v20, %v1159_v58  ;;  %v5257_v20 = vld [vmem:[#allocation4_spill] sm:$0xff]  ;;  %v3843_v31 = vpack.c.bf16 %v1779_v49, %v1778_v43  ;;  %v2044_v56 = vld [vmem:[%s5214_s5 + $0x18] sm:$0xff]  ;;  %v2446_v43 = vld [vmem:[%s5216_s6] ss:$0 sm:$0xff] }
 0x268   :  { %v1180_v10 = vmul.f32 1.442695, %v1166_v63  ;;  %v3851_v58 = vpack.c.bf16 %v2044_v56, %v2043_v50 }
 0x269   :  { %v1182_v11 = vmul.f32 1.442695, %v1167_v1  ;;  %3707 = vmatpush3.bf16.msra.mxu0 %v4372_v46  ;;  %3728 = vmatpush3.bf16.msra.mxu1 %v4350_v39 }
 0x26a   :  { %3886 = vpow2.f32 %v1180_v10  ;;  %3708 = vmatprep.subr.bf16.mxu0 %v5249_v4  ;;  %3729 = vmatprep.subr.bf16.mxu1 %v5249_v4 }
 0x26b   :  { %3888 = vpow2.f32 %v1182_v11 }
 0x26d   :  { %3710 = vmatpush3.bf16.msra.mxu0 %v4396_v54  ;;  %3731 = vmatpush3.bf16.msra.mxu1 %v4374_v47 }
 0x26e   :  { %3732 = vmatprep.subr.bf16.mxu1 %v5249_v4  ;;  %3735 = vmatprep.subr.bf16.mxu0 %v5249_v4 }
 0x271   :  { %3734 = vmatpush3.bf16.msra.mxu1 %v4398_v55 }
 0x272   :  { %3759 = vmatprep.subr.bf16.mxu1 %v5249_v4 }
 0x274   :  { %v4959_v18 = vpop.eup %3886 }
 0x275   :  { %v4961_v21 = vpop.eup %3888  ;;  %1196 = vadd.xlane.f32.xlu0 %v4959_v18 }
 0x276   :  { %1198 = vadd.xlane.f32.xlu1 %v4961_v21 }
 0x282   :  { %v1189_v28 = vpop.xlane.xlu0 %1188 }
 0x283   :  { %3890 = vrcp.f32 %v1189_v28 }
 0x286   :  { %v1191_v29 = vpop.xlane.xlu1 %1190 }
 0x287   :  { %3892 = vrcp.f32 %v1191_v29 }
 0x28d   :  { %v3891_v36 = vpop.eup %3890 }
 0x28e   :  { %v1205_v39 = vmul.f32 %v3891_v36, %v4903_v32  ;;  %v3951_v32 = vld [vmem:[%s5210_s0 + $0x8] sm:$0xff] }
 0x290   :  { %3146 = vmatmul.mubr.f32.vlgmr.msra.gmra.mrb[10].mxu0 %v1205_v39  ;;  %2279 = vst [vmem:[%s5211_s8 + $0x10] sm:$0xff] %v1205_v39  ;;  %v2445_v39 = vld [vmem:[%s5215_s4] ss:$0 sm:$0xff] }
 0x291   :  { %v3893_v46 = vpop.eup %3892  ;;  %3737 = vmatpush3.bf16.msra.mxu0 %v4425_v2  ;;  %3215 = vmatprep.mubr.msk.f32.mxu0 %vm3953_vm2, %v5248_v3 }
 0x292   :  { %v1207_v47 = vmul.f32 %v3893_v46, %v4906_v0  ;;  %3738 = vmatprep.subr.bf16.mxu0 %v5249_v4  ;;  %v5258_v0 = vld [vmem:[#allocation2_spill] sm:$0xff] }
 0x294   :  { %3181 = vmatmul.mubr.f32.vlgmr.msra.gmra.mrb[10].mxu1 %v1207_v47  ;;  %2280 = vst [vmem:[%s5211_s8 + $0x18] sm:$0xff] %v1207_v47 }
 0x295   :  { %3761 = vmatpush3.bf16.msra.mxu1 %v4432_v6  ;;  %3740 = vmatpush3.bf16.msra.mxu0 %v4462_v17 }
 0x296   :  { %3762 = vmatprep.subr.bf16.mxu1 %v5249_v4  ;;  %3741 = vmatprep.subr.bf16.mxu0 %v5249_v4 }
 0x297   :  { %3250 = vmatprep.mubr.msk.f32.mxu1 %vm3953_vm2, %v5248_v3 }
 0x299   :  { %3764 = vmatpush3.bf16.msra.mxu1 %v4464_v22  ;;  %3743 = vmatpush3.bf16.msra.mxu0 %v4486_v33  ;;  %v5250_v33 = vld [vmem:[#allocation6_spill] sm:$0xff] }
 0x29a   :  { %3765 = vmatprep.subr.bf16.mxu1 %v5249_v4  ;;  %3744 = vmatprep.subr.bf16.mxu0 %v5249_v4 }
 0x29d   :  { %3767 = vmatpush3.bf16.msra.mxu1 %v4488_v34  ;;  %3746 = vmatpush3.bf16.msra.mxu0 %v4510_v45  ;;  %v5251_v34 = vld [vmem:[#allocation7_spill] sm:$0xff]  ;;  %v5252_v45 = vld [vmem:[#allocation8_spill] sm:$0xff] }
 0x29e   :  { %3768 = vmatprep.subr.bf16.mxu1 %v5249_v4  ;;  %3747 = vmatprep.subr.bf16.mxu0 %v5249_v4 }
 0x2a1   :  { %3770 = vmatpush3.bf16.msra.mxu1 %v4512_v48  ;;  %3749 = vmatpush3.bf16.msra.mxu0 %v4534_v59  ;;  %v5254_v48 = vld [vmem:[#allocation10_spill] sm:$0xff] }
 0x2a2   :  { %3771 = vmatprep.subr.bf16.mxu1 %v5249_v4  ;;  %3750 = vmatprep.subr.bf16.mxu0 %v5249_v4  ;;  %v1780_v59 = vld [vmem:[%s5212_s3] sm:$0xff] }
 0x2a5   :  { %3773 = vmatpush3.bf16.msra.mxu1 %v4536_v60  ;;  %3752 = vmatpush3.bf16.msra.mxu0 %v4558_v16  ;;  %v1781_v60 = vld [vmem:[%s5212_s3 + $0x8] sm:$0xff] }
 0x2a6   :  { %3774 = vmatprep.subr.bf16.mxu1 %v5249_v4  ;;  %3753 = vmatprep.subr.bf16.mxu0 %v5249_v4  ;;  %v5255_v16 = vld [vmem:[#allocation11_spill] sm:$0xff] }
 0x2a9   :  { %3776 = vmatpush3.bf16.msra.mxu1 %v4560_v23  ;;  %3755 = vmatpush3.bf16.msra.mxu0 %v4582_v40  ;;  %v5256_v23 = vld [vmem:[#allocation12_spill] sm:$0xff]  ;;  %v3831_v40 = vpack.c.bf16 %v1781_v60, %v1780_v59 }
 0x2aa   :  { %3777 = vmatprep.subr.bf16.mxu1 %v5249_v4  ;;  %3756 = vmatprep.subr.bf16.mxu0 %v5249_v4 }
 0x2ad   :  { %3779 = vmatpush3.bf16.msra.mxu1 %v4584_v41  ;;  %3758 = vmatpush3.bf16.msra.mxu0 %v4606_v57 }
 0x2ae   :  { %3780 = vmatprep.subr.bf16.mxu1 %v5249_v4  ;;  %3783 = vmatprep.subr.bf16.mxu0 %v5249_v4 }
 0x2b1   :  { %3782 = vmatpush3.bf16.msra.mxu1 %v4608_v61  ;;  %v1782_v61 = vld [vmem:[%s5212_s3 + $0x10] sm:$0xff] }
 0x2b2   :  { %3807 = vmatprep.subr.bf16.mxu1 %v5249_v4 }
 0x2c2   :  { %v1193_v54 = vpop.xlane.xlu0 %1192 }
 0x2c3   :  { %v1195_v55 = vpop.xlane.xlu1 %1194  ;;  %3894 = vrcp.f32 %v1193_v54 }
 0x2c4   :  { %3896 = vrcp.f32 %v1195_v55 }
 0x2cd   :  { %v3895_v2 = vpop.eup %3894 }
 0x2ce   :  { %v3897_v6 = vpop.eup %3896  ;;  %v1209_v17 = vmul.f32 %v3895_v2, %v4909_v26 }
 0x2cf   :  { %v1211_v22 = vmul.f32 %v3897_v6, %v4911_v44 }
 0x2d0   :  { %3216 = vmatmul.mubr.f32.vlgmr.msra.gmra.mrb[12].mxu0 %v1209_v17  ;;  %2281 = vst [vmem:[%s5211_s8 + $0x20] sm:$0xff] %v1209_v17 }
 0x2d1   :  { %3251 = vmatmul.mubr.f32.vlgmr.msra.gmra.mrb[12].mxu1 %v1211_v22  ;;  %2282 = vst [vmem:[%s5211_s8 + $0x28] sm:$0xff] %v1211_v22  ;;  %3785 = vmatpush3.bf16.msra.mxu0 %v4635_v30  ;;  %v1783_v30 = vld [vmem:[%s5212_s3 + $0x18] sm:$0xff] }
 0x2d2   :  { %3809 = vmatpush3.bf16.msra.mxu1 %v4642_v42  ;;  %3786 = vmatprep.subr.bf16.mxu0 %v5249_v4 }
 0x2d3   :  { %3810 = vmatprep.subr.bf16.mxu1 %v5249_v4  ;;  %3285 = vmatprep.mubr.msk.f32.mxu0 %vm3953_vm2, %v5248_v3 }
 0x2d4   :  { %3320 = vmatprep.mubr.msk.f32.mxu1 %vm3953_vm2, %v5248_v3  ;;  %v3950_v3 = vld [vmem:[%s5210_s0] sm:$0xff] }
 0x2d5   :  { %3788 = vmatpush3.bf16.msra.mxu0 %v4672_v12 }
 0x2d6   :  { %3812 = vmatpush3.bf16.msra.mxu1 %v4674_v15  ;;  %3789 = vmatprep.subr.bf16.mxu0 %v5249_v4 }
 0x2d7   :  { %3813 = vmatprep.subr.bf16.mxu1 %v5249_v4 }
 0x2d9   :  { %3791 = vmatpush3.bf16.msra.mxu0 %v4696_v9  ;;  %v3835_v9 = vpack.c.bf16 %v1783_v30, %v1782_v61 }
 0x2da   :  { %3815 = vmatpush3.bf16.msra.mxu1 %v4698_v7  ;;  %3792 = vmatprep.subr.bf16.mxu0 %v5249_v4  ;;  %v5253_v7 = vld [vmem:[#allocation9_spill] sm:$0xff] }
 0x2db   :  { %3816 = vmatprep.subr.bf16.mxu1 %v5249_v4 }
 0x2dd   :  { %3794 = vmatpush3.bf16.msra.mxu0 %v4720_v53  ;;  %v1776_v53 = vld [vmem:[%s5213_s2] sm:$0xff] }
 0x2de   :  { %3818 = vmatpush3.bf16.msra.mxu1 %v5250_v33  ;;  %3795 = vmatprep.subr.bf16.mxu0 %v5249_v4 }
 0x2df   :  { %3819 = vmatprep.subr.bf16.mxu1 %v5249_v4 }
 0x2e1   :  { %3797 = vmatpush3.bf16.msra.mxu0 %v5251_v34 }
 0x2e2   :  { %3821 = vmatpush3.bf16.msra.mxu1 %v5252_v45  ;;  %3798 = vmatprep.subr.bf16.mxu0 %v5249_v4 }
 0x2e3   :  { %3822 = vmatprep.subr.bf16.mxu1 %v5249_v4 }
 0x2e5   :  { %3800 = vmatpush3.bf16.msra.mxu0 %v5253_v7 }
 0x2e6   :  { %3824 = vmatpush3.bf16.msra.mxu1 %v5254_v48  ;;  %3801 = vmatprep.subr.bf16.mxu0 %v5249_v4 }
 0x2e7   :  { %3825 = vmatprep.subr.bf16.mxu1 %v5249_v4 }
 0x2e9   :  { %3803 = vmatpush3.bf16.msra.mxu0 %v5255_v16 }
 0x2ea   :  { %3827 = vmatpush3.bf16.msra.mxu1 %v5256_v23  ;;  %3804 = vmatprep.subr.bf16.mxu0 %v5249_v4 }
 0x2eb   :  { %3828 = vmatprep.subr.bf16.mxu1 %v5249_v4  ;;  %v3847_v4 = vpack.c.bf16 %v2042_v51, %v2041_v25 }
 0x2ed   :  { %3806 = vmatpush3.bf16.msra.mxu0 %v4816_v5  ;;  %v1777_v5 = vld [vmem:[%s5213_s2 + $0x8] sm:$0xff] }
 0x2ee   :  { %3830 = vmatpush3.bf16.msra.mxu1 %v4818_v27  ;;  %3832 = vmatprep.subr.bf16.mxu0 %v3831_v40  ;;  %v3839_v37 = vpack.c.bf16 %v1777_v5, %v1776_v53 }
 0x2ef   :  { %3855 = vmatprep.subr.bf16.mxu1 %v3831_v40 }
 0x302   :  { %v1197_v41 = vpop.xlane.xlu0 %1196 }
 0x303   :  { %v1199_v57 = vpop.xlane.xlu1 %1198  ;;  %3898 = vrcp.f32 %v1197_v41 }
 0x304   :  { %3900 = vrcp.f32 %v1199_v57 }
 0x30d   :  { %v3899_v42 = vpop.eup %3898 }
 0x30e   :  { %v3901_v12 = vpop.eup %3900  ;;  %v1213_v15 = vmul.f32 %v3899_v42, %v4959_v18 }
 0x30f   :  { %v1215_v27 = vmul.f32 %v3901_v12, %v4961_v21 }
 0x310   :  { %3286 = vmatmul.mubr.f32.vlgmr.msra.gmra.mrb[14].mxu0 %v1213_v15  ;;  %2283 = vst [vmem:[%s5211_s8 + $0x30] sm:$0xff] %v1213_v15 }
 0x311   :  { %3321 = vmatmul.mubr.f32.vlgmr.msra.gmra.mrb[14].mxu1 %v1215_v27  ;;  %2284 = vst [vmem:[%s5211_s8 + $0x38] sm:$0xff] %v1215_v27  ;;  %3834 = vmatpush3.bf16.msra.mxu0 %v3831_v40 }
 0x312   :  { %3836 = vmatprep.subr.bf16.mxu0 %v3835_v9  ;;  %3331 = vmatprep.mubr.msk.f32.mxu0 %vm164_vm0, %v3950_v3 }
 0x313   :  { %3857 = vmatpush3.bf16.msra.mxu1 %v3831_v40  ;;  %3337 = vmatprep.mubr.msk.f32.mxu1 %vm164_vm0, %v5257_v20 }
 0x314   :  { %3856 = vmatprep.subr.bf16.mxu1 %v3835_v9 }
 0x315   :  { %3838 = vmatpush3.bf16.msra.mxu0 %v3835_v9 }
 0x316   :  { %3840 = vmatprep.subr.bf16.mxu0 %v3839_v37 }
 0x317   :  { %3858 = vmatpush3.bf16.msra.mxu1 %v3835_v9 }
 0x318   :  { %3332 = vmatmul.mubr.msk.f32.vlgmr.msra.gmra.mrb[16].mxu0 %vm164_vm0, %v3951_v32  ;;  %3848 = vmatprep.subr.bf16.mxu1 %v3847_v4 }
 0x319   :  { %3842 = vmatpush3.bf16.msra.mxu0 %v3839_v37  ;;  %3334 = vmatprep.mubr.msk.f32.mxu0 %vm164_vm0, %v5258_v0 }
 0x31a   :  { %3844 = vmatprep.subr.bf16.mxu0 %v3843_v31  ;;  %3338 = vmatmul.mubr.msk.f32.vlgmr.msra.gmra.mrb[16].mxu1 %vm164_vm0, %v5259_v8 }
 0x31b   :  { %3340 = vmatprep.mubr.msk.f32.mxu1 %vm164_vm0, %v4831_v24  ;;  %3850 = vmatpush3.bf16.msra.mxu1 %v3847_v4 }
 0x31c   :  { %3335 = vmatmul.mubr.msk.f32.gmra.mrb[18].mxu0 %vm164_vm0, %v5260_v35  ;;  %3852 = vmatprep.subr.bf16.mxu1 %v3851_v58 }
 0x31d   :  { %3846 = vmatpush3.bf16.msra.mxu0 %v3843_v31 }
 0x31e   :  { %3341 = vmatmul.mubr.msk.f32.gmra.mrb[18].mxu1 %vm164_vm0, %v5261_v52 }
 0x31f   :  { %3854 = vmatpush3.bf16.msra.mxu1 %v3851_v58 }
 0x323   :  { %v1282_v62 = vpop.f32.mrb[8].mxu0 }
 0x324   :  { %v3077_v38 = vpop.f32.mrb[9].mxu0  ;;  %3351 = vmatprep.mubr.msk.f32.mxu0 %vm164_vm0, %v1282_v62 }
 0x327   :  { %v1352_v26 = vpop.f32.mrb[8].mxu1 }
 0x328   :  { %v3112_v44 = vpop.f32.mrb[9].mxu1  ;;  %3352 = vmatmul.mubr.msk.f32.vlgmr.msra.gmra.mrb[16].mxu0 %vm164_vm0, %v1352_v26 }
 0x363   :  { %v1422_v13 = vpop.f32.mrb[10].mxu0 }
 0x364   :  { %v3147_v14 = vpop.f32.mrb[11].mxu0  ;;  %3354 = vmatprep.mubr.msk.f32.mxu0 %vm164_vm0, %v1422_v13 }
 0x367   :  { %v1492_v24 = vpop.f32.mrb[10].mxu1 }
 0x368   :  { %v3182_v19 = vpop.f32.mrb[11].mxu1  ;;  %3355 = vmatmul.mubr.msk.f32.gmra.mrb[18].mxu0 %vm164_vm0, %v1492_v24 }
 0x3a3   :  { %v1562_v63 = vpop.f32.mrb[12].mxu0 }
 0x3a4   :  { %v1632_v1 = vpop.f32.mrb[12].mxu1  ;;  %v3217_v10 = vpop.f32.mrb[13].mxu0  ;;  %3357 = vmatprep.mubr.msk.f32.mxu0 %vm164_vm0, %v1562_v63 }
 0x3a5   :  { %v3252_v11 = vpop.f32.mrb[13].mxu1  ;;  %3358 = vmatmul.mubr.msk.f32.gmra.mrb[20].mxu0 %vm164_vm0, %v1632_v1 }
 0x3e3   :  { %v1702_v18 = vpop.f32.mrb[14].mxu0 }
 0x3e4   :  { %v1772_v21 = vpop.f32.mrb[14].mxu1  ;;  %v3287_v28 = vpop.f32.mrb[15].mxu0  ;;  %3360 = vmatprep.mubr.msk.f32.mxu0 %vm164_vm0, %v1702_v18 }
 0x3e5   :  { %v3322_v29 = vpop.f32.mrb[15].mxu1  ;;  %3361 = vmatmul.mubr.msk.f32.gmra.mrb[22].mxu0 %vm164_vm0, %v1772_v21 }
 0x3ed   :  { %v3339_v36 = vpop.f32.mrb[16].mxu1 }
 0x3ee   :  { %v1870_v46 = vpop.f32.mrb[17].mxu1 }
 0x3f1   :  { %v3342_v22 = vpop.f32.mrb[18].mxu1 }
 0x3f2   :  { %v1880_v33 = vpop.f32.mrb[19].mxu1 }
 0x3fb   :  { %v3353_v47 = vpop.f32.mrb[16].mxu0 }
 0x3fc   :  { %v2026_v54 = vadd.f32 %v3353_v47, %v2445_v39  ;;  %v1979_v55 = vpop.f32.mrb[17].mxu0 }
 0x3fd   :  { %v2025_v2 = vadd.f32 %v2445_v39, %v1979_v55 }
 0x3ff   :  { %3902 = vtanh.f32 %v2025_v2 }
 0x400   :  { %3904 = vtanh.f32 %v2026_v54 }
 0x409   :  { %v3903_v6 = vpop.eup %3902 }
 0x40a   :  { %v3905_v17 = vpop.eup %3904  ;;  %3371 = vmatprep.mubr.msk.f32.mxu1 %vm164_vm0, %v3903_v6 }
 0x40b   :  { %3372 = vmatmul.mubr.msk.f32.vlgmr.msra.gmra.mrb[20].mxu1 %vm164_vm0, %v3905_v17 }
 0x43b   :  { %v3356_v34 = vpop.f32.mrb[18].mxu0 }
 0x43c   :  { %v2028_v45 = vadd.f32 %v3356_v34, %v2445_v39  ;;  %v1989_v7 = vpop.f32.mrb[19].mxu0 }
 0x43d   :  { %v2027_v48 = vadd.f32 %v2445_v39, %v1989_v7 }
 0x43f   :  { %3906 = vtanh.f32 %v2027_v48 }
 0x440   :  { %3908 = vtanh.f32 %v2028_v45 }
 0x449   :  { %v3907_v59 = vpop.eup %3906 }
 0x44a   :  { %v3909_v60 = vpop.eup %3908  ;;  %3374 = vmatprep.mubr.msk.f32.mxu1 %vm164_vm0, %v3907_v59 }
 0x44b   :  { %3375 = vmatmul.mubr.msk.f32.gmra.mrb[22].mxu1 %vm164_vm0, %v3909_v60 }
 0x478   :  { %v3359_v16 = vpop.f32.mrb[20].mxu0 }
 0x479   :  { %v2005_v23 = vadd.f32 %v3359_v16, %v3339_v36  ;;  %v1999_v40 = vpop.f32.mrb[21].mxu0 }
 0x47a   :  { %v2000_v41 = vadd.f32 %v1999_v40, %v1870_v46 }
 0x47b   :  { %v2030_v57 = vadd.f32 %v2445_v39, %v2005_v23 }
 0x47c   :  { %v2029_v61 = vadd.f32 %v2445_v39, %v2000_v41 }
 0x47e   :  { %3910 = vtanh.f32 %v2029_v61 }
 0x47f   :  { %3912 = vtanh.f32 %v2030_v57 }
 0x488   :  { %v3911_v30 = vpop.eup %3910 }
 0x489   :  { %v3913_v42 = vpop.eup %3912  ;;  %3377 = vmatprep.mubr.msk.f32.mxu1 %vm164_vm0, %v3911_v30 }
 0x48a   :  { %3378 = vmatmul.mubr.msk.f32.gmra.mrb[24].mxu1 %vm164_vm0, %v3913_v42 }
 0x4b8   :  { %v3362_v12 = vpop.f32.mrb[22].mxu0 }
 0x4b9   :  { %v2015_v15 = vadd.f32 %v3362_v12, %v3342_v22  ;;  %v2009_v9 = vpop.f32.mrb[23].mxu0 }
 0x4ba   :  { %v2010_v27 = vadd.f32 %v2009_v9, %v1880_v33 }
 0x4bb   :  { %v2032_v53 = vadd.f32 %v2445_v39, %v2015_v15 }
 0x4bc   :  { %v2031_v5 = vadd.f32 %v2445_v39, %v2010_v27 }
 0x4be   :  { %3914 = vtanh.f32 %v2031_v5 }
 0x4bf   :  { %3916 = vtanh.f32 %v2032_v53 }
 0x4c8   :  { %v3915_v3 = vpop.eup %3914 }
 0x4c9   :  { %v3917_v37 = vpop.eup %3916  ;;  %3380 = vmatprep.mubr.msk.f32.mxu1 %vm164_vm0, %v3915_v3 }
 0x4ca   :  { %3381 = vmatmul.mubr.msk.f32.gmra.mrb[26].mxu1 %vm164_vm0, %v3917_v37 }
 0x4de   :  { %v3373_v49 = vpop.f32.mrb[20].mxu1 }
 0x4df   :  { %v5137_v20 = vadd.f32 %v3373_v49, %v2446_v43  ;;  %v2142_v31 = vpop.f32.mrb[21].mxu1 }
 0x4e0   :  { %v5139_v32 = vadd.f32 %v2446_v43, %v2142_v31 }
 0x4e1   :  { %2183 = vmax.xlane.f32.xlu1 %v5137_v20 }
 0x4e2   :  { %2181 = vmax.xlane.f32.xlu0 %v5139_v32 }
 0x51e   :  { %v3376_v0 = vpop.f32.mrb[22].mxu1 }
 0x51f   :  { %v5143_v8 = vadd.f32 %v3376_v0, %v2446_v43  ;;  %v2152_v35 = vpop.f32.mrb[23].mxu1 }
 0x520   :  { %v5145_v52 = vadd.f32 %v2446_v43, %v2152_v35 }
 0x521   :  { %2187 = vmax.xlane.f32.xlu1 %v5143_v8 }
 0x522   :  { %2185 = vmax.xlane.f32.xlu0 %v5145_v52 }
 0x55d   :  { %v3379_v62 = vpop.f32.mrb[24].mxu1 }
 0x55e   :  { %v5149_v38 = vadd.f32 %v3379_v62, %v2446_v43  ;;  %v2162_v26 = vpop.f32.mrb[25].mxu1 }
 0x55f   :  { %v5151_v44 = vadd.f32 %v2446_v43, %v2162_v26 }
 0x560   :  { %2191 = vmax.xlane.f32.xlu1 %v5149_v38 }
 0x561   :  { %2189 = vmax.xlane.f32.xlu0 %v5151_v44 }
 0x56e   :  { %v2184_v13 = vpop.xlane.xlu1 %2183 }
 0x56f   :  { %v5155_v14 = vpop.xlane.xlu0 %2181  ;;  %v2198_v24 = vsub.f32 %v5137_v20, %v2184_v13 }
 0x570   :  { %v2197_v19 = vsub.f32 %v5139_v32, %v5155_v14 }
 0x571   :  { %v2207_v25 = vmul.f32 1.442695, %v2198_v24 }
 0x572   :  { %v2205_v51 = vmul.f32 1.442695, %v2197_v19 }
 0x573   :  { %3918 = vpow2.f32 %v2207_v25 }
 0x574   :  { %3920 = vpow2.f32 %v2205_v51 }
 0x57d   :  { %v3919_v63 = vpop.eup %3918 }
 0x57e   :  { %v3921_v1 = vpop.eup %3920 }
 0x59d   :  { %v3382_v50 = vpop.f32.mrb[26].mxu1 }
 0x59e   :  { %v5160_v4 = vadd.f32 %v3382_v50, %v2446_v43  ;;  %v2172_v56 = vpop.f32.mrb[27].mxu1 }
 0x59f   :  { %v5162_v58 = vadd.f32 %v2446_v43, %v2172_v56 }
 0x5a0   :  { %2195 = vmax.xlane.f32.xlu1 %v5160_v4 }
 0x5a1   :  { %2193 = vmax.xlane.f32.xlu0 %v5162_v58 }
 0x5a4   :  { %2223 = vadd.xlane.f32.xlu1 %v3919_v63 }
 0x5a5   :  { %2221 = vadd.xlane.f32.xlu0 %v3921_v1 }
 0x5ae   :  { %v2188_v10 = vpop.xlane.xlu1 %2187 }
 0x5af   :  { %v2200_v11 = vsub.f32 %v5143_v8, %v2188_v10  ;;  %v2186_v18 = vpop.xlane.xlu0 %2185 }
 0x5b0   :  { %v2199_v21 = vsub.f32 %v5145_v52, %v2186_v18 }
 0x5b1   :  { %v2211_v28 = vmul.f32 1.442695, %v2200_v11 }
 0x5b2   :  { %v2209_v29 = vmul.f32 1.442695, %v2199_v21 }
 0x5b3   :  { %3922 = vpow2.f32 %v2211_v28 }
 0x5b4   :  { %3924 = vpow2.f32 %v2209_v29 }
 0x5bd   :  { %v3923_v36 = vpop.eup %3922 }
 0x5be   :  { %v3925_v39 = vpop.eup %3924  ;;  %2227 = vadd.xlane.f32.xlu1 %v3923_v36 }
 0x5bf   :  { %2225 = vadd.xlane.f32.xlu0 %v3925_v39 }
 0x5ed   :  { %v2192_v46 = vpop.xlane.xlu1 %2191 }
 0x5ee   :  { %v2202_v47 = vsub.f32 %v5149_v38, %v2192_v46  ;;  %v2190_v54 = vpop.xlane.xlu0 %2189 }
 0x5ef   :  { %v2201_v55 = vsub.f32 %v5151_v44, %v2190_v54 }
 0x5f0   :  { %v2215_v2 = vmul.f32 1.442695, %v2202_v47 }
 0x5f1   :  { %v2213_v6 = vmul.f32 1.442695, %v2201_v55 }
 0x5f2   :  { %3926 = vpow2.f32 %v2215_v2 }
 0x5f3   :  { %3928 = vpow2.f32 %v2213_v6 }
 0x5fc   :  { %v3927_v17 = vpop.eup %3926 }
 0x5fd   :  { %v3929_v22 = vpop.eup %3928  ;;  %2231 = vadd.xlane.f32.xlu1 %v3927_v17 }
 0x5fe   :  { %2229 = vadd.xlane.f32.xlu0 %v3929_v22 }
 0x62d   :  { %v5170_v33 = vpop.xlane.xlu1 %2195 }
 0x62e   :  { %v2204_v34 = vsub.f32 %v5160_v4, %v5170_v33  ;;  %v2194_v45 = vpop.xlane.xlu0 %2193 }
 0x62f   :  { %v2203_v7 = vsub.f32 %v5162_v58, %v2194_v45 }
 0x630   :  { %v2219_v48 = vmul.f32 1.442695, %v2204_v34 }
 0x631   :  { %v2217_v59 = vmul.f32 1.442695, %v2203_v7  ;;  %v2224_v60 = vpop.xlane.xlu1 %2223 }
 0x632   :  { %3930 = vpow2.f32 %v2219_v48  ;;  %v2222_v16 = vpop.xlane.xlu0 %2221 }
 0x633   :  { %3932 = vpow2.f32 %v2217_v59 }
 0x634   :  { %3934 = vlog2.f32 %v2224_v60 }
 0x635   :  { %3936 = vlog2.f32 %v2222_v16 }
 0x63c   :  { %v3931_v23 = vpop.eup %3930 }
 0x63d   :  { %v3933_v40 = vpop.eup %3932  ;;  %2235 = vadd.xlane.f32.xlu1 %v3931_v23 }
 0x63e   :  { %v3935_v41 = vpop.eup %3934  ;;  %2233 = vadd.xlane.f32.xlu0 %v3933_v40 }
 0x63f   :  { %v3937_v57 = vpop.eup %3936  ;;  %v2240_v61 = vmul.f32 0.6931472, %v3935_v41 }
 0x640   :  { %v2238_v30 = vmul.f32 0.6931472, %v3937_v57 }
 0x641   :  { %v2254_v42 = vadd.f32 %v2240_v61, %v2184_v13 }
 0x642   :  { %v2253_v12 = vadd.f32 %v2238_v30, %v5155_v14 }
 0x643   :  { %v2262_v15 = vsub.f32 %v5137_v20, %v2254_v42 }
 0x644   :  { %v2261_v9 = vsub.f32 %v5139_v32, %v2253_v12 }
 0x645   :  { %2270 = vst [vmem:[%s5217_s7 + $0x8] sm:$0xff] %v2262_v15 }
 0x646   :  { %2269 = vst [vmem:[%s5217_s7] sm:$0xff] %v2261_v9 }
 0x64b   :  { %v2228_v27 = vpop.xlane.xlu1 %2227 }
 0x64c   :  { %3938 = vlog2.f32 %v2228_v27  ;;  %v2226_v53 = vpop.xlane.xlu0 %2225 }
 0x64d   :  { %3940 = vlog2.f32 %v2226_v53 }
 0x656   :  { %v3939_v5 = vpop.eup %3938 }
 0x657   :  { %v3941_v3 = vpop.eup %3940  ;;  %v2244_v37 = vmul.f32 0.6931472, %v3939_v5 }
 0x658   :  { %v2242_v43 = vmul.f32 0.6931472, %v3941_v3 }
 0x659   :  { %v2256_v49 = vadd.f32 %v2244_v37, %v2188_v10 }
 0x65a   :  { %v2255_v20 = vadd.f32 %v2242_v43, %v2186_v18 }
 0x65b   :  { %v2264_v31 = vsub.f32 %v5143_v8, %v2256_v49 }
 0x65c   :  { %v2263_v32 = vsub.f32 %v5145_v52, %v2255_v20 }
 0x65d   :  { %2272 = vst [vmem:[%s5217_s7 + $0x18] sm:$0xff] %v2264_v31 }
 0x65e   :  { %2271 = vst [vmem:[%s5217_s7 + $0x10] sm:$0xff] %v2263_v32 }
 0x68a   :  { %v2232_v0 = vpop.xlane.xlu1 %2231 }
 0x68b   :  { %3942 = vlog2.f32 %v2232_v0  ;;  %v2230_v35 = vpop.xlane.xlu0 %2229 }
 0x68c   :  { %3944 = vlog2.f32 %v2230_v35 }
 0x695   :  { %v3943_v62 = vpop.eup %3942 }
 0x696   :  { %v3945_v26 = vpop.eup %3944  ;;  %v2248_v13 = vmul.f32 0.6931472, %v3943_v62 }
 0x697   :  { %v2246_v14 = vmul.f32 0.6931472, %v3945_v26 }
 0x698   :  { %v2258_v24 = vadd.f32 %v2248_v13, %v2192_v46 }
 0x699   :  { %v2257_v8 = vadd.f32 %v2246_v14, %v2190_v54 }
 0x69a   :  { %v2266_v52 = vsub.f32 %v5149_v38, %v2258_v24 }
 0x69b   :  { %v2265_v19 = vsub.f32 %v5151_v44, %v2257_v8 }
 0x69c   :  { %2274 = vst [vmem:[%s5217_s7 + $0x28] sm:$0xff] %v2266_v52 }
 0x69d   :  { %2273 = vst [vmem:[%s5217_s7 + $0x20] sm:$0xff] %v2265_v19 }
 0x6ca   :  { %v2236_v25 = vpop.xlane.xlu1 %2235 }
 0x6cb   :  { %3946 = vlog2.f32 %v2236_v25  ;;  %v2234_v51 = vpop.xlane.xlu0 %2233 }
 0x6cc   :  { %3948 = vlog2.f32 %v2234_v51 }
 0x6d5   :  { %v3947_v50 = vpop.eup %3946 }
 0x6d6   :  { %v3949_v56 = vpop.eup %3948  ;;  %v2252_v63 = vmul.f32 0.6931472, %v3947_v50 }
 0x6d7   :  { %v2250_v1 = vmul.f32 0.6931472, %v3949_v56 }
 0x6d8   :  { %v2260_v38 = vadd.f32 %v2252_v63, %v5170_v33 }
 0x6d9   :  { %v2259_v10 = vadd.f32 %v2250_v1, %v2194_v45 }
 0x6da   :  { %v2268_v44 = vsub.f32 %v5160_v4, %v2260_v38 }
 0x6db   :  { %v2267_v11 = vsub.f32 %v5162_v58, %v2259_v10 }
 0x6dc   :  { %2276 = vst [vmem:[%s5217_s7 + $0x38] sm:$0xff] %v2268_v44 }
 0x6dd   :  { %2275 = vst [vmem:[%s5217_s7 + $0x30] sm:$0xff] %v2267_v11 }

</bundles_post_ra>
